<compile_context>
chip_gen: v5e
topology: v5e:2x2
jax: 0.10.0
libtpu: 0.0.40
codegen_flags: <defaults>
</compile_context>

<pallas_src>
import functools

import jax
import jax.numpy as jnp
from jax.experimental import pallas as pl
from jax.experimental.pallas import tpu as pltpu

LEAKY_SLOPE = 0.1
BN_EPS = 1e-5
TN = 128  # output-channel tile (lane-dense); 256 pays off on v6e/v7x if cout>=256


def _round_up(x, m):
    return (x + m - 1) // m * m


def _pick_row_tile(ho, wo, other_steps):
    """Largest divisor of ho with rows*wo <= 256 (register-resident f32 acc),
    shrunk until the total grid has >= 4 steps (v7x megacore + pipelining)."""
    divs = [d for d in range(1, ho + 1) if ho % d == 0]
    cand = [d for d in divs if d * wo <= 256] or [1]
    rows = max(cand)
    while other_steps * (ho // rows) < 4:
        smaller = [d for d in cand if d < rows]
        if not smaller:
            break
        rows = max(smaller)
    return rows


# ------------------------------ Pallas kernel -------------------------------

def _yolo_block_kernel(xp_ref, w_ref, b_ref, o_ref, *, k, stride, rows, wo,
                       cin, tn):
    """Fused conv (single K=k*k*Cin matmul) + folded-BN bias + LeakyReLU.

    xp_ref: (1, Hp, Wp, Cin)    bf16 padded NHWC image (whole image, resident)
    w_ref:  (k*k*Cin, TN)       bf16 BN-folded im2col weight tile
    b_ref:  (1, TN)             f32 folded BN bias
    o_ref:  (1, rows, Wo, TN)   bf16 output row tile
    """
    m = rows * wo
    r = pl.program_id(1)                                   # output-row tile
    row0 = pl.multiple_of(r * rows * stride, rows * stride)

    taps = []
    for t in range(k * k):        # static unroll: build im2col LHS in-regs
        dy, dx = divmod(t, k)
        if stride == 1:
            win = xp_ref[0, pl.ds(row0 + dy, rows), pl.ds(dx, wo), :]
        else:
            # TODO(synk): stride>1 along W lowers to sublane-strided gathers;
            # restructure W subsampling (even/odd split) for hot stride-2 blocks.
            win = xp_ref[0, pl.ds(row0 + dy, rows, stride=stride),
                         pl.ds(dx, wo, stride=stride), :]
        taps.append(win.reshape(m, cin))
    lhs = jnp.concatenate(taps, axis=-1)                   # (m, k*k*cin) bf16

    acc = jnp.dot(lhs, w_ref[...], preferred_element_type=jnp.float32)
    y = acc + b_ref[...]                                   # broadcast (1, TN)
    y = jnp.maximum(y, LEAKY_SLOPE * y)                    # LeakyReLU(0.1)
    o_ref[...] = y.reshape(1, rows, wo, tn).astype(o_ref.dtype)


# ------------------------ one-time parameter folding ------------------------

def fold_conv_bn(params, *, tn=TN):
    """Fold BN(eval) into the conv weights.

    Returns:
      w_mat: (k*k*Cin, Cout_p) bf16, rows ordered (dy, dx, cin) to match the
             in-kernel im2col column order, BN scale folded in.
      bias:  (1, Cout_p) f32 folded BN bias.
      cout:  original Cout (for slicing the padded output in the NCHW wrapper).
    """
    w = params['w']                                     # (Cout, Cin, k, k)
    cout, cin, k, _ = w.shape
    scale = params['gamma'] / jnp.sqrt(params['var'] + BN_EPS)
    bias = params['beta'] - params['mean'] * scale
    w_folded = w * scale[:, None, None, None]
    w_mat = jnp.transpose(w_folded, (2, 3, 1, 0)).reshape(k * k * cin, cout)
    cout_p = _round_up(cout, tn)
    w_pad = jnp.zeros((k * k * cin, cout_p), jnp.bfloat16)
    w_pad = w_pad.at[:, :cout].set(w_mat.astype(jnp.bfloat16))
    b_pad = jnp.zeros((1, cout_p), jnp.float32).at[0, :cout].set(bias)
    return w_pad, b_pad, int(cout)


# ------------------------- NHWC-native fused forward -------------------------

@functools.partial(jax.jit, static_argnames=("k", "stride", "padding", "tn"))
def yolo_block_apply_nhwc(x_nhwc, w_mat, bias, *, k, stride, padding, tn=TN):
    """Fused YoloBlock on NHWC activations. bf16 out, Cout zero-padded to tn.

    Chain YoloBlocks through this entry point (keeping activations in NHWC
    bf16) so no NCHW<->NHWC transposes or channel slices sit between blocks.
    """
    n, h, w, cin = x_nhwc.shape
    kkcin, cout_p = w_mat.shape
    assert kkcin == k * k * cin, (kkcin, k, cin)
    ho = (h + 2 * padding - k) // stride + 1
    wo = (w + 2 * padding - k) // stride + 1
    hp, wp = h + 2 * padding, w + 2 * padding

    # cast + spatial pad (fused by XLA into one pass over the activation)
    xp = jnp.pad(x_nhwc.astype(jnp.bfloat16),
                 ((0, 0), (padding, padding), (padding, padding), (0, 0)))

    cout_tiles = cout_p // tn
    rows = _pick_row_tile(ho, wo, n * cout_tiles)
    # TODO(synk): if rows*wo can exceed 256, move acc to a VMEM scratch instead.

    kernel = functools.partial(_yolo_block_kernel, k=k, stride=stride,
                               rows=rows, wo=wo, cin=cin, tn=tn)
    return pl.pallas_call(
        kernel,
        out_shape=jax.ShapeDtypeStruct((n, ho, wo, cout_p), jnp.bfloat16),
        grid=(n, ho // rows, cout_tiles),
        in_specs=[
            # whole padded image: resident across the row/cout grid axes
            pl.BlockSpec((1, hp, wp, cin), lambda i, r, j: (i, 0, 0, 0)),
            pl.BlockSpec((kkcin, tn), lambda i, r, j: (0, j)),
            pl.BlockSpec((1, tn), lambda i, r, j: (0, j)),
        ],
        out_specs=pl.BlockSpec((1, rows, wo, tn), lambda i, r, j: (i, r, 0, j)),
        compiler_params=pltpu.CompilerParams(
            dimension_semantics=("parallel", "parallel", "parallel")),
    )(xp, w_mat, bias)


# ----------------------- PyTorch-compatible NCHW wrapper ---------------------

@functools.partial(jax.jit, static_argnames=("stride", "padding", "cout", "tn"))
def yolo_block_forward(x_nchw, w_mat, bias, *, stride, padding, cout, tn=TN):
    """PyTorch-equivalent forward: LeakyReLU(BN(Conv(x))). NCHW f32 in/out."""
    n, cin, h, w = x_nchw.shape
    kkcin = w_mat.shape[0]
    k = int(round((kkcin // cin) ** 0.5))
    x_nhwc = jnp.transpose(x_nchw, (0, 2, 3, 1))
    out = yolo_block_apply_nhwc(x_nhwc, w_mat, bias, k=k, stride=stride,
                                padding=padding, tn=tn)
    # channel slice + transpose + f32 cast fuse into a single XLA pass
    return jnp.transpose(out[..., :cout], (0, 3, 1, 2)).astype(jnp.float32)


# ------------------------------ pure-JAX reference ---------------------------

def yolo_block_ref(x_nchw, params, *, stride, padding):
    w = params['w']
    out = jax.lax.conv_general_dilated(
        x_nchw, w, window_strides=(stride, stride),
        padding=((padding, padding), (padding, padding)),
        dimension_numbers=('NCHW', 'OIHW', 'NCHW'))
    scale = params['gamma'] / jnp.sqrt(params['var'] + BN_EPS)
    bias = params['beta'] - params['mean'] * scale
    out = out * scale[None, :, None, None] + bias[None, :, None, None]
    return jnp.where(out > 0, out, LEAKY_SLOPE * out)


# ----------------------------------- main ------------------------------------

if __name__ == "__main__":
    key = jax.random.PRNGKey(0)
    k_w, k_bn, k_x = jax.random.split(key, 3)

    # YoloBlock(conv_num=0, nFilter1=4, nFilter2=32, size=3, stride=1, padding=1)
    cin, cout, ksz, stride, padding = 4, 32, 3, 1, 1
    fan_in = cin * ksz * ksz
    kb1, kb2, kb3, kb4 = jax.random.split(k_bn, 4)
    params = dict(
        w=jax.random.normal(k_w, (cout, cin, ksz, ksz), jnp.float32)
          / jnp.sqrt(fan_in),
        gamma=1.0 + 0.1 * jax.random.normal(kb1, (cout,), jnp.float32),
        beta=0.1 * jax.random.normal(kb2, (cout,), jnp.float32),
        mean=0.1 * jax.random.normal(kb3, (cout,), jnp.float32),
        var=0.9 + 0.1 * jnp.abs(jax.random.normal(kb4, (cout,), jnp.float32)),
    )
    x = jax.random.normal(k_x, (2, cin, 16, 16), jnp.float32)  # NCHW like PyTorch

    # One-time weight prep (BN-folded, im2col-ordered, padded, bf16), outside jit.
    w_mat, bias, cout_ = fold_conv_bn(params, tn=TN)

    out = yolo_block_forward(x, w_mat, bias, stride=stride, padding=padding,
                             cout=cout_, tn=TN)
    jax.block_until_ready(out)
    assert out.shape == (2, cout, 16, 16), out.shape
    assert bool(jnp.all(jnp.isfinite(out)))

    # Correctness vs f32 reference (bf16 matmul operands + bf16 store -> loose tol).
    ref = yolo_block_ref(x, params, stride=stride, padding=padding)
    max_err = float(jnp.max(jnp.abs(out - ref)))
    assert max_err < 1e-1, max_err

    print("KERNEL_OK")
</pallas_src>

<mosaic_0001>
module attributes {stable_mosaic.version = 11 : i64} {
  func.func @_yolo_block_kernel(%arg0: i32, %arg1: i32, %arg2: i32, %arg3: memref<1x18x18x4xbf16, #tpu.memory_space<vmem>>, %arg4: memref<36x128xbf16, #tpu.memory_space<vmem>>, %arg5: memref<1x128xf32, #tpu.memory_space<vmem>>, %arg6: memref<1x8x16x128xbf16, #tpu.memory_space<vmem>>) attributes {dimension_semantics = [#tpu.dimension_semantics<parallel>, #tpu.dimension_semantics<parallel>, #tpu.dimension_semantics<parallel>], iteration_bounds = array<i64: 2, 2, 1>, scalar_prefetch = 0 : i64, scratch_operands = 0 : i64, tpu.core_type = #tpu.core_type<tc>, window_params = [{transform_indices = @transform_0, window_bounds = array<i64: 1, 18, 18, 4>}, {transform_indices = @transform_1, window_bounds = array<i64: 36, 128>}, {transform_indices = @transform_2, window_bounds = array<i64: 1, 128>}, {transform_indices = @transform_3, window_bounds = array<i64: 1, 8, 16, 128>}]} {
    %c8_i32 = arith.constant 8 : i32
    %0 = arith.muli %arg1, %c8_i32 : i32
    %c1_i32 = arith.constant 1 : i32
    %1 = arith.muli %0, %c1_i32 : i32
    %2 = tpu.assume_multiple %1, 8 : i32
    %c0_i32 = arith.constant 0 : i32
    %3 = arith.addi %2, %c0_i32 : i32
    %c0 = arith.constant 0 : index
    %4 = arith.index_cast %3 : i32 to index
    %c0_0 = arith.constant 0 : index
    %c0_1 = arith.constant 0 : index
    %5 = vector.load %arg3[%c0, %4, %c0_0, %c0_1] : memref<1x18x18x4xbf16, #tpu.memory_space<vmem>>, vector<1x8x16x4xbf16>
    %6 = vector.shape_cast %5 : vector<1x8x16x4xbf16> to vector<8x16x4xbf16>
    %7 = vector.shape_cast %6 : vector<8x16x4xbf16> to vector<128x4xbf16>
    %c0_i32_2 = arith.constant 0 : i32
    %8 = arith.addi %2, %c0_i32_2 : i32
    %c0_3 = arith.constant 0 : index
    %9 = arith.index_cast %8 : i32 to index
    %c1 = arith.constant 1 : index
    %c0_4 = arith.constant 0 : index
    %10 = vector.load %arg3[%c0_3, %9, %c1, %c0_4] : memref<1x18x18x4xbf16, #tpu.memory_space<vmem>>, vector<1x8x16x4xbf16>
    %11 = vector.shape_cast %10 : vector<1x8x16x4xbf16> to vector<8x16x4xbf16>
    %12 = vector.shape_cast %11 : vector<8x16x4xbf16> to vector<128x4xbf16>
    %c0_i32_5 = arith.constant 0 : i32
    %13 = arith.addi %2, %c0_i32_5 : i32
    %c0_6 = arith.constant 0 : index
    %14 = arith.index_cast %13 : i32 to index
    %c2 = arith.constant 2 : index
    %c0_7 = arith.constant 0 : index
    %15 = vector.load %arg3[%c0_6, %14, %c2, %c0_7] : memref<1x18x18x4xbf16, #tpu.memory_space<vmem>>, vector<1x8x16x4xbf16>
    %16 = vector.shape_cast %15 : vector<1x8x16x4xbf16> to vector<8x16x4xbf16>
    %17 = vector.shape_cast %16 : vector<8x16x4xbf16> to vector<128x4xbf16>
    %c1_i32_8 = arith.constant 1 : i32
    %18 = arith.addi %2, %c1_i32_8 : i32
    %c0_9 = arith.constant 0 : index
    %19 = arith.index_cast %18 : i32 to index
    %c0_10 = arith.constant 0 : index
    %c0_11 = arith.constant 0 : index
    %20 = vector.load %arg3[%c0_9, %19, %c0_10, %c0_11] : memref<1x18x18x4xbf16, #tpu.memory_space<vmem>>, vector<1x8x16x4xbf16>
    %21 = vector.shape_cast %20 : vector<1x8x16x4xbf16> to vector<8x16x4xbf16>
    %22 = vector.shape_cast %21 : vector<8x16x4xbf16> to vector<128x4xbf16>
    %c1_i32_12 = arith.constant 1 : i32
    %23 = arith.addi %2, %c1_i32_12 : i32
    %c0_13 = arith.constant 0 : index
    %24 = arith.index_cast %23 : i32 to index
    %c1_14 = arith.constant 1 : index
    %c0_15 = arith.constant 0 : index
    %25 = vector.load %arg3[%c0_13, %24, %c1_14, %c0_15] : memref<1x18x18x4xbf16, #tpu.memory_space<vmem>>, vector<1x8x16x4xbf16>
    %26 = vector.shape_cast %25 : vector<1x8x16x4xbf16> to vector<8x16x4xbf16>
    %27 = vector.shape_cast %26 : vector<8x16x4xbf16> to vector<128x4xbf16>
    %c1_i32_16 = arith.constant 1 : i32
    %28 = arith.addi %2, %c1_i32_16 : i32
    %c0_17 = arith.constant 0 : index
    %29 = arith.index_cast %28 : i32 to index
    %c2_18 = arith.constant 2 : index
    %c0_19 = arith.constant 0 : index
    %30 = vector.load %arg3[%c0_17, %29, %c2_18, %c0_19] : memref<1x18x18x4xbf16, #tpu.memory_space<vmem>>, vector<1x8x16x4xbf16>
    %31 = vector.shape_cast %30 : vector<1x8x16x4xbf16> to vector<8x16x4xbf16>
    %32 = vector.shape_cast %31 : vector<8x16x4xbf16> to vector<128x4xbf16>
    %c2_i32 = arith.constant 2 : i32
    %33 = arith.addi %2, %c2_i32 : i32
    %c0_20 = arith.constant 0 : index
    %34 = arith.index_cast %33 : i32 to index
    %c0_21 = arith.constant 0 : index
    %c0_22 = arith.constant 0 : index
    %35 = vector.load %arg3[%c0_20, %34, %c0_21, %c0_22] : memref<1x18x18x4xbf16, #tpu.memory_space<vmem>>, vector<1x8x16x4xbf16>
    %36 = vector.shape_cast %35 : vector<1x8x16x4xbf16> to vector<8x16x4xbf16>
    %37 = vector.shape_cast %36 : vector<8x16x4xbf16> to vector<128x4xbf16>
    %c2_i32_23 = arith.constant 2 : i32
    %38 = arith.addi %2, %c2_i32_23 : i32
    %c0_24 = arith.constant 0 : index
    %39 = arith.index_cast %38 : i32 to index
    %c1_25 = arith.constant 1 : index
    %c0_26 = arith.constant 0 : index
    %40 = vector.load %arg3[%c0_24, %39, %c1_25, %c0_26] : memref<1x18x18x4xbf16, #tpu.memory_space<vmem>>, vector<1x8x16x4xbf16>
    %41 = vector.shape_cast %40 : vector<1x8x16x4xbf16> to vector<8x16x4xbf16>
    %42 = vector.shape_cast %41 : vector<8x16x4xbf16> to vector<128x4xbf16>
    %c2_i32_27 = arith.constant 2 : i32
    %43 = arith.addi %2, %c2_i32_27 : i32
    %c0_28 = arith.constant 0 : index
    %44 = arith.index_cast %43 : i32 to index
    %c2_29 = arith.constant 2 : index
    %c0_30 = arith.constant 0 : index
    %45 = vector.load %arg3[%c0_28, %44, %c2_29, %c0_30] : memref<1x18x18x4xbf16, #tpu.memory_space<vmem>>, vector<1x8x16x4xbf16>
    %46 = vector.shape_cast %45 : vector<1x8x16x4xbf16> to vector<8x16x4xbf16>
    %47 = vector.shape_cast %46 : vector<8x16x4xbf16> to vector<128x4xbf16>
    %48 = tpu.concatenate %7, %12, %17, %22, %27, %32, %37, %42, %47 in 1 : vector<128x4xbf16>, vector<128x4xbf16>, vector<128x4xbf16>, vector<128x4xbf16>, vector<128x4xbf16>, vector<128x4xbf16>, vector<128x4xbf16>, vector<128x4xbf16>, vector<128x4xbf16> -> vector<128x36xbf16>
    %c0_31 = arith.constant 0 : index
    %c0_32 = arith.constant 0 : index
    %49 = vector.load %arg4[%c0_31, %c0_32] : memref<36x128xbf16, #tpu.memory_space<vmem>>, vector<36x128xbf16>
    %cst = arith.constant dense<0.000000e+00> : vector<128x128xf32>
    %50 = tpu.matmul %48, %49, %cst {dimension_numbers = #tpu.dot_dimension_numbers<[1], [0], [0], [1], [0, 0, 1, 1], [], []>} : vector<128x36xbf16>, vector<36x128xbf16>, vector<128x128xf32> -> vector<128x128xf32>
    %c0_33 = arith.constant 0 : index
    %c0_34 = arith.constant 0 : index
    %51 = vector.load %arg5[%c0_33, %c0_34] : memref<1x128xf32, #tpu.memory_space<vmem>>, vector<1x128xf32>
    %52 = vector.broadcast %51 : vector<1x128xf32> to vector<128x128xf32>
    %53 = arith.addf %50, %52 : vector<128x128xf32>
    %cst_35 = arith.constant 1.000000e-01 : f32
    %54 = vector.broadcast %cst_35 : f32 to vector<128x128xf32>
    %55 = arith.mulf %54, %53 : vector<128x128xf32>
    %56 = arith.maximumf %53, %55 : vector<128x128xf32>
    %57 = vector.shape_cast %56 : vector<128x128xf32> to vector<1x8x16x128xf32>
    %58 = arith.truncf %57 : vector<1x8x16x128xf32> to vector<1x8x16x128xbf16>
    %c0_36 = arith.constant 0 : index
    %c0_37 = arith.constant 0 : index
    %c0_38 = arith.constant 0 : index
    %c0_39 = arith.constant 0 : index
    %59 = vector.load %arg6[%c0_36, %c0_37, %c0_38, %c0_39] : memref<1x8x16x128xbf16, #tpu.memory_space<vmem>>, vector<1x8x16x128xbf16>
    tpu.vector_store %arg6[%c0_36, %c0_37, %c0_38, %c0_39], %58 {strides = array<i32>} : memref<1x8x16x128xbf16, #tpu.memory_space<vmem>>, vector<1x8x16x128xbf16>,
    return
  }
  func.func @transform_0(%arg0: i32, %arg1: i32, %arg2: i32) -> (i32, i32, i32, i32) {
    %c0_i32 = arith.constant 0 : i32
    %c0_i32_0 = arith.constant 0 : i32
    %c0_i32_1 = arith.constant 0 : i32
    %c0_i32_2 = arith.constant 0 : i32
    return %arg0, %c0_i32, %c0_i32_0, %c0_i32_1 : i32, i32, i32, i32
  }
  func.func @transform_1(%arg0: i32, %arg1: i32, %arg2: i32) -> (i32, i32) {
    %c0_i32 = arith.constant 0 : i32
    %c0_i32_0 = arith.constant 0 : i32
    return %c0_i32, %arg2 : i32, i32
  }
  func.func @transform_2(%arg0: i32, %arg1: i32, %arg2: i32) -> (i32, i32) {
    %c0_i32 = arith.constant 0 : i32
    %c0_i32_0 = arith.constant 0 : i32
    return %c0_i32, %arg2 : i32, i32
  }
  func.func @transform_3(%arg0: i32, %arg1: i32, %arg2: i32) -> (i32, i32, i32, i32) {
    %c0_i32 = arith.constant 0 : i32
    %c0_i32_0 = arith.constant 0 : i32
    return %arg0, %arg1, %c0_i32, %arg2 : i32, i32, i32, i32
  }
}

</mosaic_0001>

<bundles_post_ra>
// kernel: yolo_block_apply_nhwc.1
= control target key start
LH: loop header
LB: loop body
LE: loop exit
PB: predicated region body
PF: predicated region fallthrough
CT: control target
= control target key end

     0   :  { %8 = vsyncpa [#allocation3], 0  ;;  %s3310_s0 = inlined_call_operand.vmem [shape: bf16[2,18,18,4], index: 0, kind: input, shape index: {}]   ;;  %s3311_s1 = inlined_call_operand.vmem [shape: bf16[36,128], index: 1, kind: input, shape index: {}]   ;;  %s3312_s2 = inlined_call_operand.vmem [shape: f32[1,128], index: 2, kind: input, shape index: {}]   ;;  %s3313_s3 = inlined_call_operand.hbm [shape: bf16[2,16,16,128], index: 3, kind: output, shape index: {}]  }
   0x1   :  { %10 = vsyncpa [#allocation3 + $0x1], 0  ;;  %s2476_s12 = smov 0   ;;  %s2478_s13 = smov 0  }
   0x2   :  { %s2480_s14 = smov 0   ;;  %s2482_s15 = smov 0  }
   0x3   :  { %s2484_s16 = smov 0   ;;  %s2486_s17 = smov 0  }
   0x4   :  { %s2488_s18 = smov 0   ;;  %s2490_s19 = smov 0  }
   0x5 LB: > { %s1962_s20 = sadd.s32 4294967295, %s2445_s19   ;;  %s1963_s21 = sadd.s32 4294967294, %s2445_s19   ;;  %s2445_s19 = sphi %s2490_s19, %s16_s19   ;;  %s2441_s18 = sphi %s2488_s18, %s3326_s18   ;;  %s2437_s17 = sphi %s2486_s17, %s3325_s17   ;;  %s2433_s16 = sphi %s2484_s16, %s3324_s16   ;;  %s2429_s15 = sphi %s2482_s15, %s3323_s15   ;;  %s2425_s14 = sphi %s2480_s14, %s3322_s14   ;;  %s2421_s13 = sphi %s2478_s13, %s3321_s13   ;;  %s2417_s12 = sphi %s2476_s12, %s3320_s12  }
   0x6   : > { %s31_s22 = sadd.s32 1, %s2437_s17  ;;  %s35_s23 = sadd.s32 1, %s2441_s18 }
   0x7   : > { %p33_p0 = scmp.ge.s32.totalorder %s31_s22, 2  ;;  %p134_p1 = scmp.ne.s32.totalorder %s2425_s14, %s2421_s13 }
   0x8   : > { %p135_p2 = scmp.eq.s32.totalorder %s1962_s20, 3  ;;  %p140_p5 = scmp.ne.s32.totalorder %s2421_s13, %s2417_s12 }
   0x9   : > { %s3328_s22 = smov (%p33_p0, %s31_s22), 0  ;;  %s3330_s23 = smov (!%p33_p0, %s35_s23), %s2441_s18 }
   0xa   : > { %s118_s24 = ssub.s32 %s2437_s17, %s3328_s22  ;;  %p2527_p3 = por %p135_p2, %p134_p1 }
   0xb   : > { %p37_p4 = scmp.ge.s32.totalorder %s3330_s23, 2  ;;  %p141_p6 = scmp.eq.s32.totalorder %s1963_s21, 3 }
   0xc   : > { %p1968_p7 = scmp.ge.s32.totalorder %s2445_s19, 1  ;;  %p180_p9 = scmp.lt.s32.totalorder %s2445_s19, 5 }
   0xd   : > { %s3332_s23 = smov (%p37_p4, %s3330_s23), 0  ;;  %p2536_p8 = por %p141_p6, %p140_p5 }
   0xe   : > { %s117_s27 = ssub.s32 %s2441_s18, %s3332_s23  ;;  %s124_s28 = sadd.s32 1, %s2425_s14 }
   0xf   : > { %s119_s29 = sor.u32 %s118_s24, %s117_s27  ;;  %p181_p10 = pnand %p1968_p7, %p180_p9 }
  0x10   : > { %p122_p11 = scmp.eq.s32.totalorder %s119_s29, 0  ;;  %p211_p12 = scmp.lt.s32.totalorder (!%p181_p10), %s2433_s16, 1 }
  0x11   : > { %184 = sbr.rel (%p181_p10) target bundleno = 473 (0x1d9), region = 32  ;;  %s2447_s11 = smov (!%p181_p10), 12  }
  0x12   : > { %s2545_s30 = scalar_select %p122_p11, %s2425_s14, %s124_s28  }
  0x13   : > { %s2185_s5 = smul.u32 (!%p181_p10), 96, %s2429_s15  ;;  %s2448_s20 = smov (!%p181_p10), 8  }
  0x14   : > { %s2449_s21 = smov (!%p181_p10), 4   ;;  %s2450_s24 = smov (!%p181_p10), 16  }
  0x15   : > { %s2451_s27 = smov (!%p181_p10), 24   ;;  %s2452_s28 = smov (!%p181_p10), 20  }
  0x16   : > { %s212_s4 = scalar_select %p211_p12, %s2433_s16, 1  ;;  %vm480_vm0 = vcmask 1042432   ;;  %vm481_vm1 = vcmask 1046532   ;;  %vm253_vm3 = vsmask.f32 3328  ;;  %vm1523_vm6 = vcmask 31744  }
  0x17   : > { %vm2555_vm2 = vmor %vm480_vm0, %vm481_vm1  ;;  %vm254_vm4 = vsmask.f32 7440  ;;  %s2453_s29 = smov 28   ;;  %vm1548_vm7 = vcmask 64512   ;;  %vm1565_vm8 = vcmask 97280   ;;  %vm1708_vm9 = vcmask 1041408  }
  0x18   : > { %s2269_s6 = smul.u32 216, %s212_s4  ;;  %vm2575_vm5 = vmor %vm253_vm3, %vm254_vm4  ;;  %s2454_s4 = smov 32   ;;  %vm1582_vm10 = vcmask 130048   ;;  %vm1599_vm11 = vcmask 162816   ;;  %vm1616_vm12 = vcmask 195584   ;;  %vm1633_vm13 = vcmask 228352  }
  0x19   : > { %vm1650_vm14 = vcmask 261120   ;;  %vm1691_vm15 = vcmask 293888  }
  0x1a   : > { %s215_s9 = scalar_lea.vmem %s3310_s0, %s2269_s6 }
  0x1b   : > { %s2553_s10 = scalar_lea.vmem %s215_s9, %s2185_s5 }
  0x1c   : > { %v238_v1 = vld [vmem:[%s2553_s10 + $0x34] sm:$0xf]  ;;  %v249_v2 = vld [vmem:[%s2553_s10 + $0x38] sm:$0x1]  ;;  %v452_v3 = vld [vmem:[%s2553_s10 + $0x30] sm:$0xe] }
  0x1d   : > { %v1978_v4 = vrot.slane %v452_v3, 9  ;;  %v513_v5 = vrot.slane %v238_v1, 5  ;;  %v516_v6 = vrot.slane %v249_v2, 5  ;;  %v237_v7 = vld [vmem:[%s2553_s10 + $0x30] sm:$0xf]  ;;  %v362_v8 = vshll.u32 %v238_v1, 16 }
  0x1e   : > { %v353_v9 = vshrl.u32 %v237_v7, 16  ;;  %v356_v10 = vshll.u32 %v237_v7, 16  ;;  %v366_v11 = vshrl.u32 %v238_v1, 16  ;;  %v372_v12 = vshll.u32 %v249_v2, 16  ;;  %v242_v13 = vld [vmem:[%s2553_s10 + $0x4c] sm:$0xf] }
  0x1f   : > { %v514_v14 = vsel %vm2555_vm2, %v1978_v4, %v513_v5  ;;  %v515_v15 = vrot.slane %v513_v5, 4  ;;  %v364_v16 = vrot.slane %v362_v8, 5  ;;  %v251_v17 = vld [vmem:[%s2553_s10 + $0x50] sm:$0x1]  ;;  %v454_v18 = vld [vmem:[%s2553_s10 + $0x48] sm:$0xe] }
  0x20   : > { %v1235_v19 = vunpack.c.l.b16 %v514_v14  ;;  %v355_v20 = vrot.slane %v353_v9, 4  ;;  %v358_v21 = vrot.slane %v356_v10, 5  ;;  %v368_v22 = vrot.slane %v366_v11, 4  ;;  %v241_v23 = vld [vmem:[%s2553_s10 + $0x48] sm:$0xf]  ;;  %v2198_v24 = vld [vmem:[%s2553_s10 + $0x3c] sm:$0xff] }
  0x21   : > { %v517_v25 = vsel %vm2555_vm2, %v515_v15, %v516_v6  ;;  %v374_v26 = vrot.slane %v372_v12, 5  ;;  %v1980_v27 = vrot.slane %v454_v18, 9  ;;  %v527_v28 = vrot.slane %v242_v13, 5  ;;  %1307 = vrot.lane.b32.xlu2 %v2198_v24, %s2447_s11  ;;  %v1996_v46 = vld [vmem:[%s2553_s10 + $0x54] sm:$0xf] }
  0x22   : > { %v1236_v29 = vunpack.c.l.b16 %v517_v25  ;;  %v359_v30 = vor.u32 %v358_v21, %v355_v20  ;;  %v369_v31 = vor.u32 %v368_v22, %v364_v16  ;;  %v530_v32 = vrot.slane %v251_v17, 5  ;;  %v2590_v51 = vld [vmem:[%s2553_s10 + $0x58] sm:$0xf]  ;;  %v2594_v60 = vld [vmem:[%s2553_s10 + $0x5c] sm:$0x1] }
  0x23   : > { %v528_v34 = vsel %vm2555_vm2, %v1980_v27, %v527_v28  ;;  %v529_v35 = vrot.slane %v527_v28, 4  ;;  %v401_v36 = vshrl.u32 %v241_v23, 16  ;;  %v404_v37 = vshll.u32 %v241_v23, 16  ;;  %v2200_v52 = vld [vmem:[%s2553_s10 + $0x54] sm:$0xff]  ;;  %v1992_v3 = vld [vmem:[%s2553_s10 + $0x3c] sm:$0xf] }
  0x24   : > { %v1247_v38 = vpack.c.b16 %v1236_v29, %v1235_v19  ;;  %v360_v39 = vrot.slane %v359_v30, 4  ;;  %v370_v40 = vrot.slane %v369_v31, 4  ;;  %v1239_v41 = vunpack.c.l.b16 %v528_v34  ;;  %v2600_v8 = vld [vmem:[%s2553_s10 + $0x40] sm:$0xf]  ;;  %v2014_v22 = vld [vmem:[%s2553_s10 + $0x54] sm:$0xe] }
  0x25   : > { %v531_v42 = vsel %vm2555_vm2, %v529_v35, %v530_v32  ;;  %v403_v43 = vrot.slane %v401_v36, 4  ;;  %v406_v44 = vrot.slane %v404_v37, 5  ;;  %v410_v45 = vshll.u32 %v242_v13, 16 }
  0x26   : > { %1259 = vrot.lane.b32.xlu1 %v1247_v38, %s2448_s20  ;;  %v365_v47 = vsel %vm2575_vm5, %v360_v39, %v364_v16  ;;  %v375_v48 = vsel %vm2575_vm5, %v370_v40, %v374_v26  ;;  %v1240_v49 = vunpack.c.l.b16 %v531_v42  ;;  %v414_v50 = vshrl.u32 %v242_v13, 16  ;;  %v2608_v16 = vld [vmem:[%s2553_s10 + $0x44] sm:$0x1]  ;;  %v233_v40 = vld [vmem:[%s2553_s10 + $0x18] sm:$0xf] }
  0x27   : > { %v1195_v53 = vunpack.c.l.b16 %v365_v47  ;;  %v1196_v54 = vunpack.c.l.b16 %v375_v48  ;;  %v407_v55 = vor.u32 %v406_v44, %v403_v43  ;;  %v412_v56 = vrot.slane %v410_v45, 5  ;;  %v2624_v45 = vld [vmem:[%s2553_s10 + $0x1c] sm:$0xf] }
  0x28   : > { %v1249_v57 = vpack.c.b16 %v1240_v49, %v1239_v41  ;;  %v416_v58 = vrot.slane %v414_v50, 4  ;;  %v420_v59 = vshll.u32 %v251_v17, 16  ;;  %v712_v61 = vshrl.u32 %v1996_v46, 16 }
  0x29   : > { %v1207_v62 = vpack.c.b16 %v1196_v54, %v1195_v53  ;;  %v408_v63 = vrot.slane %v407_v55, 4  ;;  %v715_v1 = vshll.u32 %v1996_v46, 16  ;;  %v721_v2 = vshll.u32 %v2590_v51, 16  ;;  %1311 = vrot.lane.b32.xlu2 %v2200_v52, %s2447_s11 }
  0x2a   : > { %v417_v4 = vor.u32 %v416_v58, %v412_v56  ;;  %v422_v5 = vrot.slane %v420_v59, 5  ;;  %v714_v6 = vrot.slane %v712_v61, 4  ;;  %v725_v7 = vshrl.u32 %v2590_v51, 16  ;;  %v2012_v59 = vld [vmem:[%s2553_s10 + $0x3c] sm:$0xe] }
  0x2b   : > { %1219 = vrot.lane.b32.xlu0 %v1207_v62, %s2449_s21  ;;  %v413_v9 = vsel %vm2575_vm5, %v408_v63, %v412_v56  ;;  %v717_v10 = vrot.slane %v715_v1, 5  ;;  %v723_v11 = vrot.slane %v721_v2, 5  ;;  %v731_v12 = vshll.u32 %v2594_v60, 16  ;;  %v2633_v56 = vld [vmem:[%s2553_s10 + $0x20] sm:$0x1] }
  0x2c   : > { %v418_v13 = vrot.slane %v417_v4, 4  ;;  %v1199_v14 = vunpack.c.l.b16 %v413_v9  ;;  %v727_v15 = vrot.slane %v725_v7, 4  ;;  %v664_v17 = vshrl.u32 %v1992_v3, 16 }
  0x2d   : > { %v718_v18 = vor.u32 %v717_v10, %v714_v6  ;;  %v733_v19 = vrot.slane %v731_v12, 5  ;;  %v667_v20 = vshll.u32 %v1992_v3, 16  ;;  %v673_v21 = vshll.u32 %v2600_v8, 16  ;;  %v229_v10 = vld [vmem:[%s2553_s10] sm:$0xf] }
  0x2e   : > { %1263 = vrot.lane.b32.xlu1 %v1249_v57, %s2448_s20  ;;  %v423_v23 = vsel %vm2575_vm5, %v418_v13, %v422_v5  ;;  %v728_v24 = vor.u32 %v727_v15, %v723_v11  ;;  %v666_v25 = vrot.slane %v664_v17, 4  ;;  %v677_v26 = vshrl.u32 %v2600_v8, 16  ;;  %v230_v15 = vld [vmem:[%s2553_s10 + $0x4] sm:$0xf] }
  0x2f   : > { %v1200_v27 = vunpack.c.l.b16 %v423_v23  ;;  %v719_v28 = vrot.slane %v718_v18, 4  ;;  %v669_v29 = vrot.slane %v667_v20, 5  ;;  %v675_v30 = vrot.slane %v673_v21, 5  ;;  %v2206_v21 = vld [vmem:[%s2553_s10 + $0x48] sm:$0xff] }
  0x30   : > { %v729_v31 = vrot.slane %v728_v24, 4  ;;  %v679_v32 = vrot.slane %v677_v26, 4  ;;  %v683_v34 = vshll.u32 %v2608_v16, 16  ;;  %v2022_v35 = vrot.slane %v2014_v22, 9  ;;  %v245_v26 = vld [vmem:[%s2553_s10 + $0x8] sm:$0x1] }
  0x31   : > { %v1209_v36 = vpack.c.b16 %v1200_v27, %v1199_v14  ;;  %v724_v37 = vsel %vm2575_vm5, %v719_v28, %v723_v11  ;;  %v670_v38 = vor.u32 %v669_v29, %v666_v25  ;;  %v835_v39 = vrot.slane %v2590_v51, 5  ;;  %v448_v29 = vld [vmem:[%s2553_s10] sm:$0xe] }
  0x32   : > { %v734_v41 = vsel %vm2575_vm5, %v729_v31, %v733_v19  ;;  %v1327_v42 = vunpack.c.l.b16 %v724_v37  ;;  %v680_v43 = vor.u32 %v679_v32, %v675_v30  ;;  %v685_v44 = vrot.slane %v683_v34, 5 }
  0x33   : > { %1223 = vrot.lane.b32.xlu0 %v1209_v36, %s2449_s21  ;;  %v1328_v46 = vunpack.c.l.b16 %v734_v41  ;;  %v671_v47 = vrot.slane %v670_v38, 4  ;;  %v836_v48 = vsel %vm2555_vm2, %v2022_v35, %v835_v39  ;;  %v837_v49 = vrot.slane %v835_v39, 4  ;;  %v2038_v39 = vld [vmem:[%s2553_s10 + $0x60] sm:$0xf] }
  0x34   : > { %v681_v50 = vrot.slane %v680_v43, 4  ;;  %v838_v51 = vrot.slane %v2594_v60, 5  ;;  %v1367_v52 = vunpack.c.l.b16 %v836_v48  ;;  %v305_v53 = vshrl.u32 %v233_v40, 16 }
  0x35   : > { %v1337_v54 = vpack.c.b16 %v1328_v46, %v1327_v42  ;;  %v676_v55 = vsel %vm2575_vm5, %v671_v47, %v675_v30  ;;  %v308_v57 = vshll.u32 %v233_v40, 16  ;;  %v314_v58 = vshll.u32 %v2624_v45, 16 }
  0x36   : > { %v686_v61 = vsel %vm2575_vm5, %v681_v50, %v685_v44  ;;  %v1323_v62 = vunpack.c.l.b16 %v676_v55  ;;  %v839_v60 = vsel %vm2555_vm2, %v837_v49, %v838_v51  ;;  %v307_v63 = vrot.slane %v305_v53, 4 }
  0x37   : > { %1351 = vrot.lane.b32.xlu1 %v1337_v54, %s2450_s24  ;;  %v1324_v1 = vunpack.c.l.b16 %v686_v61  ;;  %v1368_v2 = vunpack.c.l.b16 %v839_v60  ;;  %v310_v3 = vrot.slane %v308_v57, 5  ;;  %v316_v4 = vrot.slane %v314_v58, 5  ;;  %v2039_v57 = vld [vmem:[%s2553_s10 + $0x64] sm:$0xf]  ;;  %v2048_v60 = vld [vmem:[%s2553_s10 + $0x68] sm:$0x1] }
  0x38   : > { %v318_v5 = vshrl.u32 %v2624_v45, 16  ;;  %v324_v6 = vshll.u32 %v2633_v56, 16  ;;  %v2020_v7 = vrot.slane %v2012_v59, 9  ;;  %v821_v9 = vrot.slane %v2600_v8, 5 }
  0x39   : > { %v1335_v11 = vpack.c.b16 %v1324_v1, %v1323_v62  ;;  %v1377_v12 = vpack.c.b16 %v1368_v2, %v1367_v52  ;;  %v311_v13 = vor.u32 %v310_v3, %v307_v63  ;;  %v824_v14 = vrot.slane %v2608_v16, 5  ;;  %v2056_v1 = vld [vmem:[%s2553_s10 + $0x60] sm:$0xe] }
  0x3a   : > { %v320_v17 = vrot.slane %v318_v5, 4  ;;  %v326_v18 = vrot.slane %v324_v6, 5  ;;  %v822_v19 = vsel %vm2555_vm2, %v2020_v7, %v821_v9  ;;  %v823_v20 = vrot.slane %v821_v9, 4  ;;  %v2208_v9 = vld [vmem:[%s2553_s10 + $0x60] sm:$0xff] }
  0x3b   : > { %1347 = vrot.lane.b32.xlu0 %v1335_v11, %s2450_s24  ;;  %v312_v22 = vrot.slane %v311_v13, 4  ;;  %v1363_v8 = vunpack.c.l.b16 %v822_v19  ;;  %v257_v23 = vshrl.u32 %v229_v10, 16  ;;  %v260_v24 = vshll.u32 %v229_v10, 16 }
  0x3c   : > { %v321_v25 = vor.u32 %v320_v17, %v316_v4  ;;  %v825_v16 = vsel %vm2555_vm2, %v823_v20, %v824_v14  ;;  %v266_v27 = vshll.u32 %v230_v15, 16  ;;  %v270_v28 = vshrl.u32 %v230_v15, 16  ;;  %v2034_v17 = vld [vmem:[%s2553_s10 + $0x48] sm:$0xf] }
  0x3d   : > { %v317_v30 = vsel %vm2575_vm5, %v312_v22, %v316_v4  ;;  %v1364_v31 = vunpack.c.l.b16 %v825_v16  ;;  %v259_v32 = vrot.slane %v257_v23, 4  ;;  %v262_v34 = vrot.slane %v260_v24, 5  ;;  %v2035_v22 = vld [vmem:[%s2553_s10 + $0x4c] sm:$0xf] }
  0x3e   : > { %v322_v35 = vrot.slane %v321_v25, 4  ;;  %v1191_v36 = vunpack.c.l.b16 %v317_v30  ;;  %v268_v37 = vrot.slane %v266_v27, 5  ;;  %v272_v38 = vrot.slane %v270_v28, 4  ;;  %v2046_v28 = vld [vmem:[%s2553_s10 + $0x50] sm:$0x1] }
  0x3f   : > { %1435 = vrot.lane.b32.xlu1 %v2206_v21, %s2451_s27  ;;  %v1375_v40 = vpack.c.b16 %v1364_v31, %v1363_v8  ;;  %v263_v41 = vor.u32 %v262_v34, %v259_v32  ;;  %v276_v42 = vshll.u32 %v245_v26, 16  ;;  %v1974_v43 = vrot.slane %v448_v29, 9 }
  0x40   : > { %v327_v44 = vsel %vm2575_vm5, %v322_v35, %v326_v18  ;;  %v273_v46 = vor.u32 %v272_v38, %v268_v37  ;;  %v485_v47 = vrot.slane %v230_v15, 5  ;;  %v488_v48 = vrot.slane %v245_v26, 5  ;;  %v2054_v35 = vld [vmem:[%s2553_s10 + $0x48] sm:$0xe] }
  0x41   : > { %v1192_v49 = vunpack.c.l.b16 %v327_v44  ;;  %1387 = vrot.lane.b32.xlu2 %v1375_v40, %s2452_s28  ;;  %v264_v50 = vrot.slane %v263_v41, 4  ;;  %v278_v51 = vrot.slane %v276_v42, 5  ;;  %v1020_v52 = vshrl.u32 %v2038_v39, 16 }
  0x42   : > { %v274_v53 = vrot.slane %v273_v46, 4  ;;  %v486_v54 = vsel %vm2555_vm2, %v1974_v43, %v485_v47  ;;  %v487_v55 = vrot.slane %v485_v47, 4  ;;  %v1023_v58 = vshll.u32 %v2038_v39, 16 }
  0x43   : > { %1391 = vrot.lane.b32.xlu0 %v1377_v12, %s2452_s28  ;;  %v1205_v59 = vpack.c.b16 %v1192_v49, %v1191_v36  ;;  %v269_v61 = vsel %vm2575_vm5, %v264_v50, %v268_v37  ;;  %v1227_v62 = vunpack.c.l.b16 %v486_v54  ;;  %v1022_v63 = vrot.slane %v1020_v52, 4  ;;  %v2693_v54 = vld [vmem:[%s2553_s10 + $0x10] sm:$0xf] }
  0x44   : > { %v279_v2 = vsel %vm2575_vm5, %v274_v53, %v278_v51  ;;  %v1187_v3 = vunpack.c.l.b16 %v269_v61  ;;  %v489_v4 = vsel %vm2555_vm2, %v487_v55, %v488_v48  ;;  %v1025_v5 = vrot.slane %v1023_v58, 5  ;;  %v1984_v53 = vld [vmem:[%s2553_s10 + $0xc] sm:$0xf] }
  0x45   : > { %v1188_v6 = vunpack.c.l.b16 %v279_v2  ;;  %v1228_v7 = vunpack.c.l.b16 %v489_v4  ;;  %v1029_v10 = vshll.u32 %v2039_v57, 16  ;;  %v1033_v11 = vshrl.u32 %v2039_v57, 16  ;;  %v2701_v2 = vld [vmem:[%s2553_s10 + $0x14] sm:$0x1] }
  0x46   : > { %v1026_v12 = vor.u32 %v1025_v5, %v1022_v63  ;;  %v1039_v13 = vshll.u32 %v2048_v60, 16  ;;  %v2064_v14 = vrot.slane %v2056_v1, 9  ;;  %v1143_v15 = vrot.slane %v2039_v57, 5 }
  0x47   : > { %1215 = vrot.lane.b32.xlu1 %v1205_v59, %s2449_s21  ;;  %v1203_v18 = vpack.c.b16 %v1188_v6, %v1187_v3  ;;  %v1243_v19 = vpack.c.b16 %v1228_v7, %v1227_v62  ;;  %v1031_v20 = vrot.slane %v1029_v10, 5  ;;  %v1035_v21 = vrot.slane %v1033_v11, 4  ;;  %v450_v11 = vld [vmem:[%s2553_s10 + $0x18] sm:$0xe] }
  0x48   : > { %v1027_v8 = vrot.slane %v1026_v12, 4  ;;  %v1041_v23 = vrot.slane %v1039_v13, 5  ;;  %v1144_v24 = vsel %vm2555_vm2, %v2064_v14, %v1143_v15  ;;  %v1145_v25 = vrot.slane %v1143_v15, 4 }
  0x49   : > { %1439 = vrot.lane.b32.xlu2 %v2208_v9, %s2451_s27  ;;  %v1036_v16 = vor.u32 %v1035_v21, %v1031_v20  ;;  %v1146_v26 = vrot.slane %v2048_v60, 5  ;;  %v1495_v27 = vunpack.c.l.b16 %v1144_v24  ;;  %v972_v29 = vshrl.u32 %v2034_v17, 16 }
  0x4a   : > { %v1032_v30 = vsel %vm2575_vm5, %v1027_v8, %v1031_v20  ;;  %v975_v31 = vshll.u32 %v2034_v17, 16  ;;  %v981_v32 = vshll.u32 %v2035_v22, 16  ;;  %v985_v34 = vshrl.u32 %v2035_v22, 16  ;;  %v2010_v17 = vld [vmem:[%s2553_s10 + $0x24] sm:$0xe] }
  0x4b   : > { %1211 = vrot.lane.b32.xlu0 %v1203_v18, %s2449_s21  ;;  %v1037_v36 = vrot.slane %v1036_v16, 4  ;;  %v1455_v37 = vunpack.c.l.b16 %v1032_v30  ;;  %v1147_v38 = vsel %vm2555_vm2, %v1145_v25, %v1146_v26  ;;  %v974_v39 = vrot.slane %v972_v29, 4  ;;  %v2718_v16 = vld [vmem:[%s2553_s10 + $0x2c] sm:$0x1]  ;;  %v2008_v26 = vld [vmem:[%s2553_s10 + $0xc] sm:$0xe] }
  0x4c   : > { %v1496_v40 = vunpack.c.l.b16 %v1147_v38  ;;  %v977_v41 = vrot.slane %v975_v31, 5  ;;  %v983_v42 = vrot.slane %v981_v32, 5  ;;  %v987_v43 = vrot.slane %v985_v34, 4 }
  0x4d   : > { %v1042_v44 = vsel %vm2575_vm5, %v1037_v36, %v1041_v23  ;;  %v991_v46 = vshll.u32 %v2046_v28, 16  ;;  %v2062_v47 = vrot.slane %v2054_v35, 9  ;;  %v1129_v48 = vrot.slane %v2035_v22, 5  ;;  %v2714_v22 = vld [vmem:[%s2553_s10 + $0x28] sm:$0xf] }
  0x4e   : > { %v1456_v49 = vunpack.c.l.b16 %v1042_v44  ;;  %v1505_v50 = vpack.c.b16 %v1496_v40, %v1495_v27  ;;  %v978_v51 = vor.u32 %v977_v41, %v974_v39  ;;  %v988_v52 = vor.u32 %v987_v43, %v983_v42 }
  0x4f   : > { %1251 = vrot.lane.b32.xlu1 %v1243_v19, %s2448_s20  ;;  %v993_v55 = vrot.slane %v991_v46, 5  ;;  %v1130_v57 = vsel %vm2555_vm2, %v2062_v47, %v1129_v48  ;;  %v1131_v58 = vrot.slane %v1129_v48, 4  ;;  %v1132_v59 = vrot.slane %v2046_v28, 5  ;;  %v2738_v48 = vld [vmem:[%s2553_s10 + $0x1c] sm:$0xf] }
  0x50   : > { %v1465_v61 = vpack.c.b16 %v1456_v49, %v1455_v37  ;;  %v979_v62 = vrot.slane %v978_v51, 4  ;;  %v989_v60 = vrot.slane %v988_v52, 4  ;;  %v1491_v63 = vunpack.c.l.b16 %v1130_v57  ;;  %v2746_v57 = vld [vmem:[%s2553_s10 + $0x20] sm:$0x1] }
  0x51   : > { %v1133_v1 = vsel %vm2555_vm2, %v1131_v58, %v1132_v59  ;;  %v568_v3 = vshrl.u32 %v1984_v53, 16  ;;  %v571_v4 = vshll.u32 %v1984_v53, 16  ;;  %v577_v5 = vshll.u32 %v2693_v54, 16 }
  0x52   : > { %v984_v6 = vsel %vm2575_vm5, %v979_v62, %v983_v42  ;;  %v994_v7 = vsel %vm2575_vm5, %v989_v60, %v993_v55  ;;  %v1492_v9 = vunpack.c.l.b16 %v1133_v1  ;;  %v581_v10 = vshrl.u32 %v2693_v54, 16  ;;  %v2026_v42 = vld [vmem:[%s2553_s10 + $0x18] sm:$0xf]  ;;  %v1988_v1 = vld [vmem:[%s2553_s10 + $0x24] sm:$0xf] }
  0x53   : > { %1479 = vrot.lane.b32.xlu0 %v1465_v61, %s2453_s29  ;;  %v1451_v12 = vunpack.c.l.b16 %v984_v6  ;;  %v1452_v13 = vunpack.c.l.b16 %v994_v7  ;;  %v570_v14 = vrot.slane %v568_v3, 4  ;;  %v573_v15 = vrot.slane %v571_v4, 5 }
  0x54   : > { %v1503_v18 = vpack.c.b16 %v1492_v9, %v1491_v63  ;;  %v579_v19 = vrot.slane %v577_v5, 5  ;;  %v583_v20 = vrot.slane %v581_v10, 4  ;;  %v587_v21 = vshll.u32 %v2701_v2, 16 }
  0x55   : > { %v1463_v8 = vpack.c.b16 %v1452_v13, %v1451_v12  ;;  %v574_v23 = vor.u32 %v573_v15, %v570_v14  ;;  %v1976_v24 = vrot.slane %v450_v11, 9  ;;  %v499_v25 = vrot.slane %v2624_v45, 5  ;;  %v2760_v14 = vld [vmem:[%s2553_s10 + $0x34] sm:$0xf] }
  0x56   : > { %v584_v27 = vor.u32 %v583_v20, %v579_v19  ;;  %v589_v28 = vrot.slane %v587_v21, 5  ;;  %v502_v29 = vrot.slane %v2633_v56, 5  ;;  %v2018_v30 = vrot.slane %v2010_v17, 9  ;;  %v2052_v20 = vld [vmem:[%s2553_s10 + $0x30] sm:$0xe] }
  0x57   : > { %1519 = vrot.lane.b32.xlu1 %v1505_v50, %s2454_s4  ;;  %1475 = vrot.lane.b32.xlu2 %v1463_v8, %s2453_s29  ;;  %v575_v31 = vrot.slane %v574_v23, 4  ;;  %v500_v32 = vsel %vm2555_vm2, %v1976_v24, %v499_v25  ;;  %v501_v45 = vrot.slane %v499_v25, 4  ;;  %v807_v34 = vrot.slane %v2714_v22, 5  ;;  %v2194_v25 = vld [vmem:[%s2553_s10 + $0xc] sm:$0xff] }
  0x58   : > { %v585_v35 = vrot.slane %v584_v27, 4  ;;  %v1231_v36 = vunpack.c.l.b16 %v500_v32  ;;  %v810_v37 = vrot.slane %v2718_v16, 5  ;;  %v2016_v56 = vrot.slane %v2008_v26, 9 }
  0x59   : > { %v580_v38 = vsel %vm2575_vm5, %v575_v31, %v579_v19  ;;  %v503_v39 = vsel %vm2555_vm2, %v501_v45, %v502_v29  ;;  %v808_v40 = vsel %vm2555_vm2, %v2018_v30, %v807_v34  ;;  %v809_v41 = vrot.slane %v807_v34, 4  ;;  %v2769_v30 = vld [vmem:[%s2553_s10 + $0x38] sm:$0x1]  ;;  %v2050_v34 = vld [vmem:[%s2553_s10 + $0x18] sm:$0xe] }
  0x5a   : > { %v590_v43 = vsel %vm2575_vm5, %v585_v35, %v589_v28  ;;  %v1315_v44 = vunpack.c.l.b16 %v580_v38  ;;  %v1232_v46 = vunpack.c.l.b16 %v503_v39  ;;  %v1359_v47 = vunpack.c.l.b16 %v808_v40 }
  0x5b   : > { %1515 = vrot.lane.b32.xlu0 %v1503_v18, %s2454_s4  ;;  %v1316_v49 = vunpack.c.l.b16 %v590_v43  ;;  %v811_v50 = vsel %vm2555_vm2, %v809_v41, %v810_v37  ;;  %v793_v51 = vrot.slane %v2693_v54, 5  ;;  %v796_v52 = vrot.slane %v2701_v2, 5  ;;  %v2196_v2 = vld [vmem:[%s2553_s10 + $0x24] sm:$0xff] }
  0x5c   : > { %v1245_v53 = vpack.c.b16 %v1232_v46, %v1231_v36  ;;  %v1360_v55 = vunpack.c.l.b16 %v811_v50  ;;  %v876_v58 = vshrl.u32 %v2026_v42, 16  ;;  %v879_v59 = vshll.u32 %v2026_v42, 16 }
  0x5d   : > { %v1331_v61 = vpack.c.b16 %v1316_v49, %v1315_v44  ;;  %v794_v62 = vsel %vm2555_vm2, %v2016_v56, %v793_v51  ;;  %v795_v60 = vrot.slane %v793_v51, 4  ;;  %v885_v63 = vshll.u32 %v2738_v48, 16  ;;  %v2788_v51 = vld [vmem:[%s2553_s10 + $0x40] sm:$0xf] }
  0x5e   : > { %v1373_v3 = vpack.c.b16 %v1360_v55, %v1359_v47  ;;  %v878_v54 = vrot.slane %v876_v58, 4  ;;  %v881_v4 = vrot.slane %v879_v59, 5  ;;  %v889_v7 = vshrl.u32 %v2738_v48, 16 }
  0x5f   : > { %1339 = vrot.lane.b32.xlu1 %v1331_v61, %s2450_s24  ;;  %1255 = vrot.lane.b32.xlu2 %v1245_v53, %s2448_s20  ;;  %v797_v5 = vsel %vm2555_vm2, %v795_v60, %v796_v52  ;;  %v887_v6 = vrot.slane %v885_v63, 5  ;;  %v895_v9 = vshll.u32 %v2746_v57, 16  ;;  %v1355_v10 = vunpack.c.l.b16 %v794_v62  ;;  %v453_v52 = vld [vmem:[%s2553_s10 + $0x3c] sm:$0xe]  ;;  %v2795_v61 = vld [vmem:[%s2553_s10 + $0x44] sm:$0x1] }
  0x60   : > { %v882_v11 = vor.u32 %v881_v4, %v878_v54  ;;  %v616_v12 = vshrl.u32 %v1988_v1, 16  ;;  %v619_v13 = vshll.u32 %v1988_v1, 16  ;;  %v1356_v15 = vunpack.c.l.b16 %v797_v5  ;;  %v2030_v62 = vld [vmem:[%s2553_s10 + $0x30] sm:$0xf] }
  0x61   : > { %v891_v17 = vrot.slane %v889_v7, 4  ;;  %v625_v18 = vshll.u32 %v2714_v22, 16  ;;  %v629_v19 = vshrl.u32 %v2714_v22, 16  ;;  %v897_v8 = vrot.slane %v895_v9, 5 }
  0x62   : > { %v883_v21 = vrot.slane %v882_v11, 4  ;;  %v618_v23 = vrot.slane %v616_v12, 4  ;;  %v621_v24 = vrot.slane %v619_v13, 5  ;;  %v635_v29 = vshll.u32 %v2718_v16, 16  ;;  %v243_v13 = vld [vmem:[%s2553_s10 + $0x54] sm:$0xf] }
  0x63   : > { %1303 = vrot.lane.b32.xlu0 %v2196_v2, %s2447_s11  ;;  %v892_v26 = vor.u32 %v891_v17, %v887_v6  ;;  %v627_v27 = vrot.slane %v625_v18, 5  ;;  %v631_v28 = vrot.slane %v629_v19, 4  ;;  %v2060_v32 = vrot.slane %v2052_v20, 9  ;;  %v2811_v20 = vld [vmem:[%s2553_s10 + $0x58] sm:$0xf] }
  0x64   : > { %v888_v31 = vsel %vm2575_vm5, %v883_v21, %v887_v6  ;;  %v622_v22 = vor.u32 %v621_v24, %v618_v23  ;;  %v1115_v45 = vrot.slane %v2760_v14, 5  ;;  %v1371_v35 = vpack.c.b16 %v1356_v15, %v1355_v10  ;;  %v2204_v21 = vld [vmem:[%s2553_s10 + $0x30] sm:$0xff] }
  0x65   : > { %v893_v36 = vrot.slane %v892_v26, 4  ;;  %v632_v37 = vor.u32 %v631_v28, %v627_v27  ;;  %v637_v56 = vrot.slane %v635_v29, 5  ;;  %v1118_v40 = vrot.slane %v2769_v30, 5 }
  0x66   : > { %v623_v38 = vrot.slane %v622_v22, 4  ;;  %v1116_v16 = vsel %vm2555_vm2, %v2060_v32, %v1115_v45  ;;  %v1117_v39 = vrot.slane %v1115_v45, 4  ;;  %v1443_v42 = vunpack.c.l.b16 %v888_v31 }
  0x67   : > { %1383 = vrot.lane.b32.xlu1 %v1373_v3, %s2452_s28  ;;  %1299 = vrot.lane.b32.xlu2 %v2194_v25, %s2447_s11  ;;  %v898_v41 = vsel %vm2575_vm5, %v893_v36, %v897_v8  ;;  %v633_v43 = vrot.slane %v632_v37, 4  ;;  %v2058_v44 = vrot.slane %v2050_v34, 9  ;;  %v1101_v50 = vrot.slane %v2738_v48, 5  ;;  %v239_v34 = vld [vmem:[%s2553_s10 + $0x3c] sm:$0xf] }
  0x68   : > { %v1444_v46 = vunpack.c.l.b16 %v898_v41  ;;  %v628_v47 = vsel %vm2575_vm5, %v623_v38, %v627_v27  ;;  %v1119_v49 = vsel %vm2555_vm2, %v1117_v39, %v1118_v40  ;;  %v1487_v58 = vunpack.c.l.b16 %v1116_v16 }
  0x69   : > { %v638_v53 = vsel %vm2575_vm5, %v633_v43, %v637_v56  ;;  %v1319_v55 = vunpack.c.l.b16 %v628_v47  ;;  %v1104_v59 = vrot.slane %v2746_v57, 5  ;;  %v1488_v63 = vunpack.c.l.b16 %v1119_v49 }
  0x6a   : > { %v1320_v60 = vunpack.c.l.b16 %v638_v53  ;;  %v1102_v1 = vsel %vm2555_vm2, %v2058_v44, %v1101_v50  ;;  %v1103_v48 = vrot.slane %v1101_v50, 4  ;;  %v1459_v3 = vpack.c.b16 %v1444_v46, %v1443_v42 }
  0x6b   : > { %1379 = vrot.lane.b32.xlu0 %v1371_v35, %s2452_s28  ;;  %v1483_v54 = vunpack.c.l.b16 %v1102_v1  ;;  %v1979_v4 = vrot.slane %v453_v52, 9  ;;  %v520_v2 = vrot.slane %v2788_v51, 5  ;;  %v523_v6 = vrot.slane %v2795_v61, 5  ;;  %v2013_v52 = vld [vmem:[%s2553_s10 + $0x48] sm:$0xe] }
  0x6c   : > { %v1333_v5 = vpack.c.b16 %v1320_v60, %v1319_v55  ;;  %v1105_v57 = vsel %vm2555_vm2, %v1103_v48, %v1104_v59  ;;  %v924_v7 = vshrl.u32 %v2030_v62, 16  ;;  %v927_v12 = vshll.u32 %v2030_v62, 16  ;;  %v2835_v62 = vld [vmem:[%s2553_s10 + $0x4c] sm:$0xf] }
  0x6d   : > { %v1484_v9 = vunpack.c.l.b16 %v1105_v57  ;;  %v521_v10 = vsel %vm2555_vm2, %v1979_v4, %v520_v2  ;;  %v522_v11 = vrot.slane %v520_v2, 4  ;;  %v1501_v15 = vpack.c.b16 %v1488_v63, %v1487_v58 }
  0x6e   : > { %v926_v17 = vrot.slane %v924_v7, 4  ;;  %v933_v18 = vshll.u32 %v2760_v14, 16  ;;  %v937_v19 = vshrl.u32 %v2760_v14, 16  ;;  %v1237_v23 = vunpack.c.l.b16 %v521_v10  ;;  %v2820_v14 = vld [vmem:[%s2553_s10 + $0x5c] sm:$0x1] }
  0x6f   : > { %1467 = vrot.lane.b32.xlu1 %v1459_v3, %s2453_s29  ;;  %1343 = vrot.lane.b32.xlu2 %v1333_v5, %s2450_s24  ;;  %v524_v8 = vsel %vm2555_vm2, %v522_v11, %v523_v6  ;;  %v929_v24 = vrot.slane %v927_v12, 5  ;;  %v943_v25 = vshll.u32 %v2769_v30, 16  ;;  %v1499_v26 = vpack.c.b16 %v1484_v9, %v1483_v54  ;;  %v2202_v30 = vld [vmem:[%s2553_s10 + $0x18] sm:$0xff]  ;;  %v2844_v7 = vld [vmem:[%s2553_s10 + $0x50] sm:$0x1] }
  0x70   : > { %v935_v27 = vrot.slane %v933_v18, 5  ;;  %v939_v28 = vrot.slane %v937_v19, 4  ;;  %v425_v29 = vshrl.u32 %v243_v13, 16  ;;  %v1238_v31 = vunpack.c.l.b16 %v524_v8  ;;  %v455_v10 = vld [vmem:[%s2553_s10 + $0x54] sm:$0xe] }
  0x71   : > { %v930_v22 = vor.u32 %v929_v24, %v926_v17  ;;  %v428_v32 = vshll.u32 %v243_v13, 16  ;;  %v434_v45 = vshll.u32 %v2811_v20, 16  ;;  %v945_v36 = vrot.slane %v943_v25, 5  ;;  %v1998_v19 = vld [vmem:[%s2553_s10 + $0x60] sm:$0xf] }
  0x72   : > { %v940_v35 = vor.u32 %v939_v28, %v935_v27  ;;  %v427_v37 = vrot.slane %v425_v29, 4  ;;  %v438_v56 = vshrl.u32 %v2811_v20, 16  ;;  %v444_v40 = vshll.u32 %v2820_v14, 16  ;;  %v2860_v29 = vld [vmem:[%s2553_s10 + $0x64] sm:$0xf] }
  0x73   : > { %1431 = vrot.lane.b32.xlu0 %v2204_v21, %s2451_s27  ;;  %v931_v38 = vrot.slane %v930_v22, 4  ;;  %v430_v16 = vrot.slane %v428_v32, 5  ;;  %v436_v39 = vrot.slane %v434_v45, 5  ;;  %v377_v43 = vshrl.u32 %v239_v34, 16 }
  0x74   : > { %v941_v41 = vrot.slane %v940_v35, 4  ;;  %v440_v42 = vrot.slane %v438_v56, 4  ;;  %v380_v44 = vshll.u32 %v239_v34, 16  ;;  %v446_v49 = vrot.slane %v444_v40, 5 }
  0x75   : > { %v936_v46 = vsel %vm2575_vm5, %v931_v38, %v935_v27  ;;  %v431_v47 = vor.u32 %v430_v16, %v427_v37  ;;  %v386_v50 = vshll.u32 %v2788_v51, 16  ;;  %v379_v59 = vrot.slane %v377_v43, 4  ;;  %v1994_v16 = vld [vmem:[%s2553_s10 + $0x48] sm:$0xf] }
  0x76   : > { %v946_v53 = vsel %vm2575_vm5, %v941_v41, %v945_v36  ;;  %v1447_v55 = vunpack.c.l.b16 %v936_v46  ;;  %v441_v58 = vor.u32 %v440_v42, %v436_v39  ;;  %v382_v1 = vrot.slane %v380_v44, 5  ;;  %v2869_v36 = vld [vmem:[%s2553_s10 + $0x68] sm:$0x1] }
  0x77   : > { %1511 = vrot.lane.b32.xlu1 %v1501_v15, %s2454_s4  ;;  %1427 = vrot.lane.b32.xlu2 %v2202_v30, %s2451_s27  ;;  %v1448_v60 = vunpack.c.l.b16 %v946_v53  ;;  %v432_v63 = vrot.slane %v431_v47, 4  ;;  %v388_v48 = vrot.slane %v386_v50, 5  ;;  %v390_v54 = vshrl.u32 %v2788_v51, 16 }
  0x78   : > { %v442_v3 = vrot.slane %v441_v58, 4  ;;  %v396_v4 = vshll.u32 %v2795_v61, 16  ;;  %v2021_v2 = vrot.slane %v2013_v52, 9  ;;  %v1248_v5 = vpack.c.b16 %v1238_v31, %v1237_v23 }
  0x79   : > { %v437_v57 = vsel %vm2575_vm5, %v432_v63, %v436_v39  ;;  %v383_v6 = vor.u32 %v382_v1, %v379_v59  ;;  %v828_v9 = vrot.slane %v2835_v62, 5  ;;  %v1461_v11 = vpack.c.b16 %v1448_v60, %v1447_v55 }
  0x7a   : > { %v447_v12 = vsel %vm2575_vm5, %v442_v3, %v446_v49  ;;  %v1201_v13 = vunpack.c.l.b16 %v437_v57  ;;  %v392_v51 = vrot.slane %v390_v54, 4  ;;  %v398_v8 = vrot.slane %v396_v4, 5  ;;  %v2201_v49 = vld [vmem:[%s2553_s10 + $0x60] sm:$0xff]  ;;  %v2036_v54 = vld [vmem:[%s2553_s10 + $0x54] sm:$0xf] }
  0x7b   : > { %1507 = vrot.lane.b32.xlu0 %v1499_v26, %s2454_s4  ;;  %v1202_v61 = vunpack.c.l.b16 %v447_v12  ;;  %v384_v15 = vrot.slane %v383_v6, 4  ;;  %v829_v17 = vsel %vm2555_vm2, %v2021_v2, %v828_v9  ;;  %v830_v18 = vrot.slane %v828_v9, 4  ;;  %v2886_v6 = vld [vmem:[%s2553_s10 + $0x58] sm:$0xf]  ;;  %v2199_v9 = vld [vmem:[%s2553_s10 + $0x48] sm:$0xff] }
  0x7c   : > { %v393_v21 = vor.u32 %v392_v51, %v388_v48  ;;  %v831_v23 = vrot.slane %v2844_v7, 5  ;;  %v1981_v24 = vrot.slane %v455_v10, 9  ;;  %v1365_v27 = vunpack.c.l.b16 %v829_v17  ;;  %v2896_v17 = vpop.permute.xlu2 %1307 }
  0x7d   : > { %v389_v25 = vsel %vm2575_vm5, %v384_v15, %v388_v48  ;;  %v534_v28 = vrot.slane %v2811_v20, 5  ;;  %v537_v26 = vrot.slane %v2820_v14, 5  ;;  %v1210_v31 = vpack.c.b16 %v1202_v61, %v1201_v13  ;;  %v2894_v13 = vld [vmem:[%s2553_s10 + $0x5c] sm:$0x1] }
  0x7e   : > { %v394_v22 = vrot.slane %v393_v21, 4  ;;  %v832_v32 = vsel %vm2555_vm2, %v830_v18, %v831_v23  ;;  %v736_v45 = vshrl.u32 %v1998_v19, 16  ;;  %v1197_v34 = vunpack.c.l.b16 %v389_v25 }
  0x7f   : > { %1261 = vrot.lane.b32.xlu1 %v1248_v5, %s2448_s20  ;;  %1471 = vrot.lane.b32.xlu2 %v1461_v11, %s2453_s29  ;;  %v535_v35 = vsel %vm2555_vm2, %v1981_v24, %v534_v28  ;;  %v536_v20 = vrot.slane %v534_v28, 4  ;;  %v739_v14 = vshll.u32 %v1998_v19, 16  ;;  %v1366_v56 = vunpack.c.l.b16 %v832_v32  ;;  %v2015_v28 = vld [vmem:[%s2553_s10 + $0x60] sm:$0xe] }
  0x80   : > { %v399_v37 = vsel %vm2575_vm5, %v394_v22, %v398_v8  ;;  %v738_v30 = vrot.slane %v736_v45, 4  ;;  %v745_v38 = vshll.u32 %v2860_v29, 16  ;;  %v1241_v41 = vunpack.c.l.b16 %v535_v35  ;;  %v235_v45 = vld [vmem:[%s2553_s10 + $0x24] sm:$0xf] }
  0x81   : > { %v1198_v39 = vunpack.c.l.b16 %v399_v37  ;;  %v538_v40 = vsel %vm2555_vm2, %v536_v20, %v537_v26  ;;  %v741_v42 = vrot.slane %v739_v14, 5  ;;  %v749_v46 = vshrl.u32 %v2860_v29, 16  ;;  %v2909_v37 = vld [vmem:[%s2553_s10 + $0x28] sm:$0xf] }
  0x82   : > { %v1242_v43 = vunpack.c.l.b16 %v538_v40  ;;  %v747_v44 = vrot.slane %v745_v38, 5  ;;  %v755_v47 = vshll.u32 %v2869_v36, 16  ;;  %v688_v53 = vshrl.u32 %v1994_v16, 16 }
  0x83   : > { %1225 = vrot.lane.b32.xlu0 %v1210_v31, %s2449_s21  ;;  %v1208_v50 = vpack.c.b16 %v1198_v39, %v1197_v34  ;;  %v742_v52 = vor.u32 %v741_v42, %v738_v30  ;;  %v691_v55 = vshll.u32 %v1994_v16, 16  ;;  %v1376_v58 = vpack.c.b16 %v1366_v56, %v1365_v27 }
  0x84   : > { %v751_v59 = vrot.slane %v749_v46, 4  ;;  %v697_v60 = vshll.u32 %v2835_v62, 16  ;;  %v690_v1 = vrot.slane %v688_v53, 4  ;;  %v701_v3 = vshrl.u32 %v2835_v62, 16  ;;  %v248_v53 = vld [vmem:[%s2553_s10 + $0x2c] sm:$0x1] }
  0x85   : > { %v743_v63 = vrot.slane %v742_v52, 4  ;;  %v693_v48 = vrot.slane %v691_v55, 5  ;;  %v757_v2 = vrot.slane %v755_v47, 5  ;;  %v707_v57 = vshll.u32 %v2844_v7, 16 }
  0x86   : > { %v752_v4 = vor.u32 %v751_v59, %v747_v44  ;;  %v699_v5 = vrot.slane %v697_v60, 5  ;;  %v1250_v10 = vpack.c.b16 %v1242_v43, %v1241_v41  ;;  %v703_v62 = vrot.slane %v701_v3, 4 }
  0x87   : > { %1313 = vrot.lane.b32.xlu1 %v2201_v49, %s2447_s11  ;;  %1221 = vrot.lane.b32.xlu2 %v1208_v50, %s2449_s21  ;;  %v748_v11 = vsel %vm2575_vm5, %v743_v63, %v747_v44  ;;  %v694_v12 = vor.u32 %v693_v48, %v690_v1  ;;  %v709_v15 = vrot.slane %v707_v57, 5  ;;  %v996_v7 = vshrl.u32 %v2036_v54, 16  ;;  %v2929_v1 = vpop.permute.xlu2 %1311 }
  0x88   : > { %v753_v51 = vrot.slane %v752_v4, 4  ;;  %v1329_v61 = vunpack.c.l.b16 %v748_v11  ;;  %v704_v19 = vor.u32 %v703_v62, %v699_v5  ;;  %v999_v21 = vshll.u32 %v2036_v54, 16  ;;  %v451_v4 = vld [vmem:[%s2553_s10 + $0x24] sm:$0xe] }
  0x89   : > { %v695_v18 = vrot.slane %v694_v12, 4  ;;  %v1005_v8 = vshll.u32 %v2886_v6, 16  ;;  %v998_v24 = vrot.slane %v996_v7, 4  ;;  %v1009_v25 = vshrl.u32 %v2886_v6, 16 }
  0x8a   : > { %v758_v23 = vsel %vm2575_vm5, %v753_v51, %v757_v2  ;;  %v1015_v27 = vshll.u32 %v2894_v13, 16  ;;  %v705_v22 = vrot.slane %v704_v19, 4  ;;  %v1001_v32 = vrot.slane %v999_v21, 5  ;;  %v231_v2 = vld [vmem:[%s2553_s10 + $0xc] sm:$0xf]  ;;  %v2207_v21 = vld [vmem:[%s2553_s10 + $0x54] sm:$0xff] }
  0x8b   : > { %1309 = vrot.lane.b32.xlu0 %v2199_v9, %s2447_s11  ;;  %v1330_v26 = vunpack.c.l.b16 %v758_v23  ;;  %v700_v31 = vsel %vm2575_vm5, %v695_v18, %v699_v5  ;;  %v1007_v35 = vrot.slane %v1005_v8, 5  ;;  %v1011_v20 = vrot.slane %v1009_v25, 4  ;;  %v246_v25 = vld [vmem:[%s2553_s10 + $0x14] sm:$0x1] }
  0x8c   : > { %v1325_v34 = vunpack.c.l.b16 %v700_v31  ;;  %v1017_v14 = vrot.slane %v1015_v27, 5  ;;  %v710_v30 = vsel %vm2575_vm5, %v705_v22, %v709_v15  ;;  %v1002_v38 = vor.u32 %v1001_v32, %v998_v24 }
  0x8d   : > { %v1338_v56 = vpack.c.b16 %v1330_v26, %v1329_v61  ;;  %v2023_v16 = vrot.slane %v2015_v28, 9  ;;  %v1326_v39 = vunpack.c.l.b16 %v710_v30  ;;  %v1012_v40 = vor.u32 %v1011_v20, %v1007_v35  ;;  %v232_v61 = vld [vmem:[%s2553_s10 + $0x10] sm:$0xf]  ;;  %v449_v20 = vld [vmem:[%s2553_s10 + $0xc] sm:$0xe] }
  0x8e   : > { %v842_v41 = vrot.slane %v2860_v29, 5  ;;  %v845_v42 = vrot.slane %v2869_v36, 5  ;;  %v1003_v43 = vrot.slane %v1002_v38, 4  ;;  %v329_v44 = vshrl.u32 %v235_v45, 16  ;;  %v2209_v36 = vld [vmem:[%s2553_s10 + $0x6c] sm:$0xff] }
  0x8f   : > { %1389 = vrot.lane.b32.xlu1 %v1376_v58, %s2452_s28  ;;  %1265 = vrot.lane.b32.xlu2 %v1250_v10, %s2448_s20  ;;  %v332_v46 = vshll.u32 %v235_v45, 16  ;;  %v338_v47 = vshll.u32 %v2909_v37, 16  ;;  %v1013_v49 = vrot.slane %v1012_v40, 4  ;;  %v1336_v63 = vpack.c.b16 %v1326_v39, %v1325_v34  ;;  %v2040_v38 = vld [vmem:[%s2553_s10 + $0x6c] sm:$0xf] }
  0x90   : > { %v844_v50 = vrot.slane %v842_v41, 4  ;;  %v1008_v52 = vsel %vm2575_vm5, %v1003_v43, %v1007_v35  ;;  %v331_v29 = vrot.slane %v329_v44, 4  ;;  %v843_v59 = vsel %vm2555_vm2, %v2023_v16, %v842_v41 }
  0x91   : > { %v334_v55 = vrot.slane %v332_v46, 5  ;;  %v1018_v58 = vsel %vm2575_vm5, %v1013_v49, %v1017_v14  ;;  %v340_v3 = vrot.slane %v338_v47, 5  ;;  %v342_v54 = vshrl.u32 %v2909_v37, 16 }
  0x92   : > { %v846_v60 = vsel %vm2555_vm2, %v844_v50, %v845_v42  ;;  %v1453_v5 = vunpack.c.l.b16 %v1008_v52  ;;  %v1454_v57 = vunpack.c.l.b16 %v1018_v58  ;;  %v348_v9 = vshll.u32 %v248_v53, 16 }
  0x93   : > { %1353 = vrot.lane.b32.xlu0 %v1338_v56, %s2450_s24  ;;  %v335_v48 = vor.u32 %v334_v55, %v331_v29  ;;  %v506_v10 = vrot.slane %v2909_v37, 5  ;;  %v1369_v11 = vunpack.c.l.b16 %v843_v59  ;;  %v1370_v12 = vunpack.c.l.b16 %v846_v60  ;;  %v2041_v59 = vld [vmem:[%s2553_s10 + $0x70] sm:$0xf] }
  0x94   : > { %v344_v51 = vrot.slane %v342_v54, 4  ;;  %v350_v15 = vrot.slane %v348_v9, 5  ;;  %v1977_v7 = vrot.slane %v451_v4, 9  ;;  %v509_v18 = vrot.slane %v248_v53, 5 }
  0x95   : > { %v336_v62 = vrot.slane %v335_v48, 4  ;;  %v281_v19 = vshrl.u32 %v231_v2, 16  ;;  %v508_v24 = vrot.slane %v506_v10, 4  ;;  %v284_v27 = vshll.u32 %v231_v2, 16 }
  0x96   : > { %v345_v23 = vor.u32 %v344_v51, %v340_v3  ;;  %v1464_v26 = vpack.c.b16 %v1454_v57, %v1453_v5  ;;  %v290_v22 = vshll.u32 %v232_v61, 16  ;;  %v1378_v32 = vpack.c.b16 %v1370_v12, %v1369_v11 }
  0x97   : > { %1441 = vrot.lane.b32.xlu1 %v2209_v36, %s2451_s27  ;;  %1349 = vrot.lane.b32.xlu2 %v1336_v63, %s2450_s24  ;;  %v341_v8 = vsel %vm2575_vm5, %v336_v62, %v340_v3  ;;  %v283_v31 = vrot.slane %v281_v19, 4  ;;  %v286_v34 = vrot.slane %v284_v27, 5  ;;  %v294_v35 = vshrl.u32 %v232_v61, 16  ;;  %v2049_v3 = vld [vmem:[%s2553_s10 + $0x74] sm:$0x1] }
  0x98   : > { %v2942_v28 = vpop.permute.xlu1 %1259  ;;  %v346_v45 = vrot.slane %v345_v23, 4  ;;  %v1193_v14 = vunpack.c.l.b16 %v341_v8  ;;  %v507_v37 = vsel %vm2555_vm2, %v1977_v7, %v506_v10  ;;  %v292_v56 = vrot.slane %v290_v22, 5  ;;  %v1990_v8 = vld [vmem:[%s2553_s10 + $0x30] sm:$0xf] }
  0x99   : > { %v300_v30 = vshll.u32 %v246_v25, 16  ;;  %v510_v39 = vsel %vm2555_vm2, %v508_v24, %v509_v18  ;;  %v287_v40 = vor.u32 %v286_v34, %v283_v31  ;;  %v296_v41 = vrot.slane %v294_v35, 4  ;;  %v2977_v34 = vld [vmem:[%s2553_s10 + $0x34] sm:$0xf] }
  0x9a   : > { %v351_v16 = vsel %vm2575_vm5, %v346_v45, %v350_v15  ;;  %v1975_v44 = vrot.slane %v449_v20, 9  ;;  %v492_v46 = vrot.slane %v232_v61, 5  ;;  %v495_v53 = vrot.slane %v246_v25, 5  ;;  %v2057_v15 = vld [vmem:[%s2553_s10 + $0x6c] sm:$0xe] }
  0x9b   : > { %1437 = vrot.lane.b32.xlu0 %v2207_v21, %s2451_s27  ;;  %v1194_v42 = vunpack.c.l.b16 %v351_v16  ;;  %v302_v43 = vrot.slane %v300_v30, 5  ;;  %v2955_v49 = vpop.permute.xlu2 %1387  ;;  %v288_v50 = vrot.slane %v287_v40, 4  ;;  %v297_v52 = vor.u32 %v296_v41, %v292_v56 }
  0x9c   : > { %v1044_v29 = vshrl.u32 %v2040_v38, 16  ;;  %v1233_v55 = vunpack.c.l.b16 %v507_v37  ;;  %v1234_v36 = vunpack.c.l.b16 %v510_v39  ;;  %v494_v58 = vrot.slane %v492_v46, 4 }
  0x9d   : > { %v2953_v47 = vpop.permute.xlu0 %1219  ;;  %v1206_v60 = vpack.c.b16 %v1194_v42, %v1193_v14  ;;  %v293_v63 = vsel %vm2575_vm5, %v288_v50, %v292_v56  ;;  %v298_v48 = vrot.slane %v297_v52, 4  ;;  %v493_v2 = vsel %vm2555_vm2, %v1975_v44, %v492_v46  ;;  %v2055_v50 = vld [vmem:[%s2553_s10 + $0x54] sm:$0xe] }
  0x9e   : > { %v1189_v4 = vunpack.c.l.b16 %v293_v63  ;;  %v496_v5 = vsel %vm2555_vm2, %v494_v58, %v495_v53  ;;  %v1046_v9 = vrot.slane %v1044_v29, 4  ;;  %v1047_v10 = vshll.u32 %v2040_v38, 16 }
  0x9f   : > { %1477 = vrot.lane.b32.xlu1 %v1464_v26, %s2453_s29  ;;  %1393 = vrot.lane.b32.xlu2 %v1378_v32, %s2452_s28  ;;  %v303_v57 = vsel %vm2575_vm5, %v298_v48, %v302_v43  ;;  %v1053_v11 = vshll.u32 %v2041_v59, 16  ;;  %v1246_v12 = vpack.c.b16 %v1234_v36, %v1233_v55  ;;  %v1057_v51 = vshrl.u32 %v2041_v59, 16  ;;  %v2992_v43 = vld [vmem:[%s2553_s10 + $0x38] sm:$0x1]  ;;  %v2190_v48 = vld [vmem:[%s2553_s10 + $0x30] sm:$0xff] }
  0xa0   : > { %v2963_v54 = vpop.permute.xlu1 %1263  ;;  %v1190_v62 = vunpack.c.l.b16 %v303_v57  ;;  %v1063_v61 = vshll.u32 %v2049_v3, 16  ;;  %v1229_v7 = vunpack.c.l.b16 %v493_v2  ;;  %v1230_v18 = vunpack.c.l.b16 %v496_v5  ;;  %v2195_v36 = vld [vmem:[%s2553_s10 + $0x18] sm:$0xff] }
  0xa1   : > { %v1049_v19 = vrot.slane %v1047_v10, 5  ;;  %v1055_v21 = vrot.slane %v1053_v11, 5  ;;  %v1059_v24 = vrot.slane %v1057_v51, 4  ;;  %v2065_v26 = vrot.slane %v2057_v15, 9  ;;  %v3011_v15 = vld [vmem:[%s2553_s10 + $0x1c] sm:$0xf] }
  0xa2   : > { %v1204_v23 = vpack.c.b16 %v1190_v62, %v1189_v4  ;;  %v1150_v31 = vrot.slane %v2041_v59, 5  ;;  %v1153_v22 = vrot.slane %v2049_v3, 5  ;;  %v1065_v45 = vrot.slane %v1063_v61, 5 }
  0xa3   : > { %1217 = vrot.lane.b32.xlu0 %v1206_v60, %s2449_s21  ;;  %v1050_v27 = vor.u32 %v1049_v19, %v1046_v9  ;;  %v1060_v32 = vor.u32 %v1059_v24, %v1055_v21  ;;  %v640_v35 = vshrl.u32 %v1990_v8, 16  ;;  %v643_v20 = vshll.u32 %v1990_v8, 16  ;;  %v2981_v14 = vpop.permute.xlu2 %1439  ;;  %v2192_v8 = vld [vmem:[%s2553_s10 + $0x48] sm:$0xff] }
  0xa4   : > { %v1244_v37 = vpack.c.b16 %v1230_v18, %v1229_v7  ;;  %v1151_v30 = vsel %vm2555_vm2, %v2065_v26, %v1150_v31  ;;  %v1152_v38 = vrot.slane %v1150_v31, 4  ;;  %v649_v46 = vshll.u32 %v2977_v34, 16 }
  0xa5   : > { %v2974_v25 = vpop.permute.xlu0 %1223  ;;  %v1051_v56 = vrot.slane %v1050_v27, 4  ;;  %v1061_v16 = vrot.slane %v1060_v32, 4  ;;  %v642_v39 = vrot.slane %v640_v35, 4  ;;  %v645_v44 = vrot.slane %v643_v20, 5 }
  0xa6   : > { %v1154_v42 = vsel %vm2555_vm2, %v1152_v38, %v1153_v22  ;;  %v1497_v29 = vunpack.c.l.b16 %v1151_v30  ;;  %v651_v60 = vrot.slane %v649_v46, 5  ;;  %v653_v63 = vshrl.u32 %v2977_v34, 16  ;;  %v1671_v30 = vld [vmem:[%s3311_s1 + $0x10] sm:$0x3] }
  0xa7   : > { %1257 = vrot.lane.b32.xlu1 %v1246_v12, %s2448_s20  ;;  %1213 = vrot.lane.b32.xlu2 %v1204_v23, %s2449_s21  ;;  %v1056_v41 = vsel %vm2575_vm5, %v1051_v56, %v1055_v21  ;;  %v1066_v52 = vsel %vm2575_vm5, %v1061_v16, %v1065_v45  ;;  %v1498_v55 = vunpack.c.l.b16 %v1154_v42  ;;  %v646_v59 = vor.u32 %v645_v44, %v642_v39  ;;  %v1986_v12 = vld [vmem:[%s2553_s10 + $0x18] sm:$0xf]  ;;  %v2011_v42 = vld [vmem:[%s2553_s10 + $0x30] sm:$0xe] }
  0xa8   : > { %v1457_v53 = vunpack.c.l.b16 %v1056_v41  ;;  %v1458_v58 = vunpack.c.l.b16 %v1066_v52  ;;  %v659_v3 = vshll.u32 %v2992_v43, 16  ;;  %v2063_v4 = vrot.slane %v2055_v50, 9 }
  0xa9   : > { %v2985_v40 = vpop.permute.xlu1 %1351  ;;  %v1136_v2 = vrot.slane %v2886_v6, 5  ;;  %v647_v9 = vrot.slane %v646_v59, 4  ;;  %v655_v10 = vrot.slane %v653_v63, 4  ;;  %v1139_v11 = vrot.slane %v2894_v13, 5  ;;  %v3018_v13 = vld [vmem:[%s2553_s10 + $0x20] sm:$0x1] }
  0xaa   : > { %v1466_v57 = vpack.c.b16 %v1458_v58, %v1457_v53  ;;  %v1506_v62 = vpack.c.b16 %v1498_v55, %v1497_v29  ;;  %v661_v18 = vrot.slane %v659_v3, 5  ;;  %v1538_v21 = vsel %vm1523_vm6, %v2190_v48, %v2953_v47  ;;  %v2032_v63 = vld [vmem:[%s2553_s10 + $0x3c] sm:$0xf] }
  0xab   : > { %1253 = vrot.lane.b32.xlu0 %v1244_v37, %s2448_s20  ;;  %v1137_v51 = vsel %vm2555_vm2, %v2063_v4, %v1136_v2  ;;  %v1138_v61 = vrot.slane %v1136_v2, 4  ;;  %v652_v6 = vsel %vm2575_vm5, %v647_v9, %v651_v60  ;;  %v656_v7 = vor.u32 %v655_v10, %v651_v60 }
  0xac   : > { %v1493_v19 = vunpack.c.l.b16 %v1137_v51  ;;  %v592_v24 = vshrl.u32 %v1986_v12, 16  ;;  %v595_v27 = vshll.u32 %v1986_v12, 16  ;;  %v601_v45 = vshll.u32 %v3011_v15, 16  ;;  %v3067_v12 = vld [vmem:[%s2553_s10 + $0x44] sm:$0x1] }
  0xad   : > { %v3004_v5 = vpop.permute.xlu0 %1347  ;;  %v1140_v23 = vsel %vm2555_vm2, %v1138_v61, %v1139_v11  ;;  %v657_v22 = vrot.slane %v656_v7, 4  ;;  %v605_v35 = vshrl.u32 %v3011_v15, 16  ;;  %v1321_v20 = vunpack.c.l.b16 %v652_v6  ;;  %v2211_v61 = vld [vmem:[%s3311_s1 + $0x8] sm:$0xff]  ;;  %v2028_v7 = vld [vmem:[%s2553_s10 + $0x24] sm:$0xf] }
  0xae   : > { %v1494_v32 = vunpack.c.l.b16 %v1140_v23  ;;  %v594_v37 = vrot.slane %v592_v24, 4  ;;  %v597_v47 = vrot.slane %v595_v27, 5  ;;  %v611_v56 = vshll.u32 %v3018_v13, 16  ;;  %v2203_v27 = vld [vmem:[%s2553_s10 + $0x24] sm:$0xff] }
  0xaf   : > { %1301 = vrot.lane.b32.xlu1 %v2195_v36, %s2447_s11  ;;  %1481 = vrot.lane.b32.xlu2 %v1466_v57, %s2453_s29  ;;  %v1558_v38 = vsel %vm1548_vm7, %v1538_v21, %v2942_v28  ;;  %v662_v16 = vsel %vm2575_vm5, %v657_v22, %v661_v18  ;;  %v603_v41 = vrot.slane %v601_v45, 5  ;;  %v1544_v44 = vsel %vm1523_vm6, %v2192_v8, %v2974_v25  ;;  %v3057_v57 = vld [vmem:[%s2553_s10 + $0x40] sm:$0xf] }
  0xb0   : > { %v1504_v39 = vpack.c.b16 %v1494_v32, %v1493_v19  ;;  %v1322_v46 = vunpack.c.l.b16 %v662_v16  ;;  %v598_v50 = vor.u32 %v597_v47, %v594_v37  ;;  %v607_v52 = vrot.slane %v605_v35, 4  ;;  %v2197_v19 = vld [vmem:[%s2553_s10 + $0x30] sm:$0xff]  ;;  %v3087_v35 = vld [vmem:[%s2553_s10 + $0x28] sm:$0xf] }
  0xb1   : > { %v3025_v26 = vpop.permute.xlu1 %1435  ;;  %v3027_v31 = vpop.permute.xlu2 %1475  ;;  %v613_v29 = vrot.slane %v611_v56, 5  ;;  %v1685_v55 = vunpack.c.l.b16 %v1671_v30  ;;  %v814_v28 = vrot.slane %v2977_v34, 5  ;;  %v2019_v60 = vrot.slane %v2011_v42, 9  ;;  %v3092_v56 = vld [vmem:[%s2553_s10 + $0x2c] sm:$0x1]  ;;  %v2210_v42 = vld [vmem:[%s3311_s1] sm:$0xff] }
  0xb2   : > { %v1334_v36 = vpack.c.b16 %v1322_v46, %v1321_v20  ;;  %v599_v58 = vrot.slane %v598_v50, 4  ;;  %v608_v59 = vor.u32 %v607_v52, %v603_v41  ;;  %v817_v3 = vrot.slane %v2992_v43, 5 }
  0xb3   : > { %1521 = vrot.lane.b32.xlu0 %v1506_v62, %s2454_s4  ;;  %v1688_v25 = vpack.c.b16 %v1685_v55, %v1685_v55  ;;  %v816_v48 = vrot.slane %v814_v28, 4  ;;  %v3051_v4 = vsel %vm1565_vm8, %v1558_v38, %v2896_v17  ;;  %v1562_v9 = vsel %vm1548_vm7, %v1544_v44, %v2963_v54 }
  0xb4   : > { %v604_v34 = vsel %vm2575_vm5, %v599_v58, %v603_v41  ;;  %v609_v2 = vrot.slane %v608_v59, 4  ;;  %v948_v62 = vshrl.u32 %v2032_v63, 16  ;;  %v815_v54 = vsel %vm2555_vm2, %v2019_v60, %v814_v28 }
  0xb5   : > { %v3043_v53 = vpop.permute.xlu0 %1391  ;;  %v1317_v11 = vunpack.c.l.b16 %v604_v34  ;;  %v1710_v17 = vsel %vm1708_vm9, %v1688_v25, 0  ;;  %v951_v6 = vshll.u32 %v2032_v63, 16  ;;  %v818_v21 = vsel %vm2555_vm2, %v816_v48, %v817_v3 }
  0xb6   : > { %v614_v51 = vsel %vm2575_vm5, %v609_v2, %v613_v29  ;;  %2262 = vmatpush.bf16.msra.mxu3 %v1710_v17  ;;  %2261 = vmatpush.bf16.msra.mxu2 %v1710_v17  ;;  %v950_v8 = vrot.slane %v948_v62, 4  ;;  %v957_v23 = vshll.u32 %v3057_v57, 16  ;;  %v1579_v24 = vsel %vm1565_vm8, %v1562_v9, %v2929_v1 }
  0xb7   : > { %1517 = vrot.lane.b32.xlu2 %v1504_v39, %s2454_s4  ;;  %1345 = vrot.lane.b32.xlu1 %v1334_v36, %s2450_s24  ;;  %v1318_v18 = vunpack.c.l.b16 %v614_v51  ;;  %v953_v22 = vrot.slane %v951_v6, 5  ;;  %v961_v32 = vshrl.u32 %v3057_v57, 16  ;;  %v967_v45 = vshll.u32 %v3067_v12, 16 }
  0xb8   : > { %2260 = vmatpush.bf16.msra.mxu1 %v1710_v17  ;;  %1717 = vmatpush.bf16.msra.mxu0 %v1710_v17  ;;  %v959_v47 = vrot.slane %v957_v23, 5  ;;  %v900_v30 = vshrl.u32 %v2028_v7, 16  ;;  %v903_v38 = vshll.u32 %v2028_v7, 16  ;;  %v1361_v16 = vunpack.c.l.b16 %v815_v54  ;;  %v2053_v54 = vld [vmem:[%s2553_s10 + $0x3c] sm:$0xe] }
  0xb9   : > { %v3061_v10 = vpop.permute.xlu1 %1215  ;;  %v3063_v43 = vpop.permute.xlu2 %1255  ;;  %v1332_v20 = vpack.c.b16 %v1318_v18, %v1317_v11  ;;  %v1362_v39 = vunpack.c.l.b16 %v818_v21  ;;  %v954_v1 = vor.u32 %v953_v22, %v950_v8  ;;  %v963_v41 = vrot.slane %v961_v32, 4 }
  0xba   : > { %2265 = vmatpush.bf16.msra.mxu3 %v2211_v61  ;;  %2264 = vmatpush.bf16.msra.mxu2 %v2211_v61  ;;  %v902_v44 = vrot.slane %v900_v30, 4  ;;  %v905_v46 = vrot.slane %v903_v38, 5  ;;  %v909_v50 = vshll.u32 %v3087_v35, 16  ;;  %v913_v52 = vshrl.u32 %v3087_v35, 16 }
  0xbb   : > { %1341 = vrot.lane.b32.xlu0 %v1332_v20, %s2450_s24  ;;  %v955_v29 = vrot.slane %v954_v1, 4  ;;  %v964_v55 = vor.u32 %v963_v41, %v959_v47  ;;  %v969_v28 = vrot.slane %v967_v45, 5  ;;  %v919_v36 = vshll.u32 %v3092_v56, 16  ;;  %s208_s24 = sand.u32 1, %s2421_s13  }
  0xbc   : > { %2263 = vmatpush.bf16.msra.mxu1 %v2211_v61  ;;  %v1596_v58 = vsel %vm1582_vm10, %v1579_v24, %v2985_v40  ;;  %v906_v63 = vor.u32 %v905_v46, %v902_v44  ;;  %v911_v25 = vrot.slane %v909_v50, 5  ;;  %v915_v48 = vrot.slane %v913_v52, 4  ;;  %1718 = vmatpush.bf16.msra.mxu0 %v2211_v61  ;;  %v2009_v40 = vld [vmem:[%s2553_s10 + $0x18] sm:$0xe]  ;;  %s1826_s20 = scalar_lea.sflag [#allocation3], %s208_s24 }
  0xbd   : > { %v3089_v37 = vpop.permute.xlu0 %1211  ;;  %v1613_v3 = vsel %vm1599_vm11, %v1596_v58, %v3043_v53  ;;  %v1374_v34 = vpack.c.b16 %v1362_v39, %v1361_v16  ;;  %v960_v2 = vsel %vm2575_vm5, %v955_v29, %v959_v47  ;;  %v965_v9 = vrot.slane %v964_v55, 4  ;;  %v2051_v29 = vld [vmem:[%s2553_s10 + $0x24] sm:$0xe] }
  0xbe   : > { %2268 = vmatpush.bf16.msra.mxu3 %v2210_v42  ;;  %2267 = vmatpush.bf16.msra.mxu2 %v2210_v42  ;;  %v1449_v11 = vunpack.c.l.b16 %v960_v2  ;;  %v907_v17 = vrot.slane %v906_v63, 4  ;;  %v916_v62 = vor.u32 %v915_v48, %v911_v25  ;;  %v921_v51 = vrot.slane %v919_v36, 5  ;;  %v2205_v48 = vld [vmem:[%s2553_s10 + $0x3c] sm:$0xff] }
  0xbf   : > { %1305 = vrot.lane.b32.xlu2 %v2197_v19, %s2447_s11  ;;  %1429 = vrot.lane.b32.xlu1 %v2203_v27, %s2451_s27  ;;  %v1592_v61 = vsel %vm1582_vm10, %v3051_v4, %v3004_v5  ;;  %v970_v53 = vsel %vm2575_vm5, %v965_v9, %v969_v28  ;;  %v1122_v6 = vrot.slane %v3057_v57, 5  ;;  %v2017_v8 = vrot.slane %v2009_v40, 9 }
  0xc0   : > { %2266 = vmatpush.bf16.msra.mxu1 %v2210_v42  ;;  %v1450_v18 = vunpack.c.l.b16 %v970_v53  ;;  %v912_v19 = vsel %vm2575_vm5, %v907_v17, %v911_v25  ;;  %v917_v21 = vrot.slane %v916_v62, 4  ;;  %1719 = vmatpush.bf16.msra.mxu0 %v2210_v42  ;;  %v1630_v23 = vsel %vm1616_vm12, %v1613_v3, %v2981_v14 }
  0xc1   : > { %v3105_v59 = vpop.permute.xlu1 %1251  ;;  %v3107_v60 = vpop.permute.xlu2 %1299  ;;  %v2061_v5 = vrot.slane %v2053_v54, 9  ;;  %v1445_v24 = vunpack.c.l.b16 %v912_v19  ;;  %v800_v27 = vrot.slane %v3011_v15, 5  ;;  %v1124_v32 = vrot.slane %v1122_v6, 4 }
  0xc2   : > { %v1462_v4 = vpack.c.b16 %v1450_v18, %v1449_v11  ;;  %v922_v57 = vsel %vm2575_vm5, %v917_v21, %v921_v51  ;;  %v1125_v45 = vrot.slane %v3067_v12, 5  ;;  %v803_v20 = vrot.slane %v3018_v13, 5  ;;  %v2188_v11 = vld [vmem:[%s2553_s10 + $0x18] sm:$0xff] }
  0xc3   : > { %1385 = vrot.lane.b32.xlu0 %v1374_v34, %s2452_s28  ;;  %v1446_v22 = vunpack.c.l.b16 %v922_v57  ;;  %v1609_v14 = vsel %vm1599_vm11, %v1592_v61, %v2955_v49  ;;  %v801_v33 = vsel %vm2555_vm2, %v2017_v8, %v800_v27  ;;  %v802_v15 = vrot.slane %v800_v27, 4  ;;  %v2186_v61 = vld [vmem:[%s2553_s10] sm:$0xff] }
  0xc4   : > { %v1626_v16 = vsel %vm1616_vm12, %v1609_v14, %v3025_v26  ;;  %v1357_v13 = vunpack.c.l.b16 %v801_v33  ;;  %v1123_v1 = vsel %vm2555_vm2, %v2061_v5, %v1122_v6  ;;  %v1126_v41 = vsel %vm2555_vm2, %v1124_v32, %v1125_v45 }
  0xc5   : > { %v1480_v7 = vpop.permute.xlu0 %1479  ;;  %v1460_v39 = vpack.c.b16 %v1446_v22, %v1445_v24  ;;  %v804_v49 = vsel %vm2555_vm2, %v802_v15, %v803_v20  ;;  %v1643_v44 = vsel %vm1633_vm13, %v1626_v16, %v3027_v31  ;;  %v1108_v46 = vrot.slane %v3087_v35, 5  ;;  %v2191_v16 = vld [vmem:[%s2553_s10 + $0x3c] sm:$0xff] }
  0xc6   : > { %v1647_v47 = vsel %vm1633_vm13, %v1630_v23, %v1480_v7  ;;  %v1358_v42 = vunpack.c.l.b16 %v804_v49  ;;  %v1489_v55 = vunpack.c.l.b16 %v1123_v1  ;;  %v1490_v28 = vunpack.c.l.b16 %v1126_v41 }
  0xc7   : > { %1473 = vrot.lane.b32.xlu1 %v1462_v4, %s2453_s29  ;;  %v2059_v31 = vrot.slane %v2051_v29, 9  ;;  %v1110_v63 = vrot.slane %v1108_v46, 4  ;;  %v1111_v25 = vrot.slane %v3092_v56, 5  ;;  %v1532_v51 = vsel %vm1523_vm6, %v2188_v11, %v3061_v10 }
  0xc8   : > { %v1372_v52 = vpack.c.b16 %v1358_v42, %v1357_v13  ;;  %v1502_v35 = vpack.c.b16 %v1490_v28, %v1489_v55  ;;  %v1554_v53 = vsel %vm1548_vm7, %v1532_v51, %v3063_v43  ;;  %v1526_v18 = vsel %vm1523_vm6, %v2186_v61, %v3089_v37  ;;  %v2193_v28 = vld [vmem:[%s2553_s10 + $0x54] sm:$0xff] }
  0xc9   : > { %v1520_v30 = vpop.permute.xlu1 %1519  ;;  %v1344_v38 = vpop.permute.xlu2 %1343  ;;  %v1109_v34 = vsel %vm2555_vm2, %v2059_v31, %v1108_v46  ;;  %v1112_v2 = vsel %vm2555_vm2, %v1110_v63, %v1111_v25  ;;  %v1550_v19 = vsel %vm1548_vm7, %v1526_v18, %v3105_v59 }
  0xca   : > { %v1664_v12 = vsel %vm1650_vm14, %v1647_v47, %v1520_v30  ;;  %1381 = vrot.lane.b32.xlu2 %v1372_v52, %s2452_s28  ;;  %v1485_v9 = vunpack.c.l.b16 %v1109_v34  ;;  %v1486_v40 = vunpack.c.l.b16 %v1112_v2  ;;  %v1567_v43 = vsel %vm1565_vm8, %v1550_v19, %v3107_v60 }
  0xcb   : > { %2176 = vmatmul.msk.bf16.vlgmr.msra.gmra.mxu3 %vm1691_vm15, %v1664_v12  ;;  %1469 = vrot.lane.b32.xlu0 %v1460_v39, %s2453_s29  ;;  %s2212_s29 = sshll.u32 %s2429_s15, 4 }
  0xcc   : > { %v1500_v56 = vpack.c.b16 %v1486_v40, %v1485_v9 }
  0xcd   : > { %v1516_v26 = vpop.permute.xlu0 %1515 }
  0xce   : > { %v1660_v50 = vsel %vm1650_vm14, %v1643_v44, %v1516_v26 }
  0xcf   : > { %2174 = vmatmul.msk.bf16.vlgmr.msra.gmra.mxu2 %vm1691_vm15, %v1660_v50 }
  0xd1   : > { %v1340_v36 = vpop.permute.xlu1 %1339  ;;  %v1428_v58 = vpop.permute.xlu2 %1427 }
  0xd2   : > { %1433 = vrot.lane.b32.xlu2 %v2205_v48, %s2451_s27  ;;  %v1584_v5 = vsel %vm1582_vm10, %v1567_v43, %v1340_v36  ;;  %s1969_s27 = sshll.u32 %s208_s24, 6 }
  0xd3   : > { %1513 = vrot.lane.b32.xlu0 %v1502_v35, %s2454_s4  ;;  %s3241_s28 = scalar_lea.vmem [#allocation2], %s1969_s27 }
  0xd4   : > { %s1842_s8 = sshll.u32 %s3241_s28, 4  ;;  %s1843_s8 = int_to_ptr.vmem [resolvable:$true] %s1842_s8 }
  0xd5   : > { %v1304_v3 = vpop.permute.xlu0 %1303 }
  0xd6   : > { %v1571_v0 = vsel %vm1565_vm8, %v1554_v53, %v1304_v3 }
  0xd7   : > { %v1588_v21 = vsel %vm1582_vm10, %v1571_v0, %v1344_v38 }
  0xd9   : > { %v1384_v17 = vpop.permute.xlu1 %1383  ;;  %v1472_v62 = vpop.permute.xlu2 %1471 }
  0xda   : > { %1509 = vrot.lane.b32.xlu2 %v1500_v56, %s2454_s4  ;;  %v1605_v10 = vsel %vm1599_vm11, %v1588_v21, %v1384_v17  ;;  %s2181_s4 = sshll.u32 %s2433_s16, 5 }
  0xdb   : > { %s1839_s5 = sadd.s32 %s2212_s29, %s2181_s4  ;;  %s2371_s4 = scalar_lea.hbm %s3313_s3, 256 }
  0xdc   : > { %s2182_s6 = sshll.u32 %s1839_s5, 2 }
  0xdd   : > { %v1380_v54 = vpop.permute.xlu0 %1379  ;;  %s1841_s7 = scalar_lea.hbm %s3313_s3, %s2182_s6 }
  0xde   : > { %v1601_v4 = vsel %vm1599_vm11, %v1584_v5, %v1380_v54  ;;  %v2187_v54 = vld [vmem:[%s2553_s10 + $0xc] sm:$0xff]  ;;  %s1844_s9 = sshll.u32 %s1841_s7, 4  ;;  %s1845_s9 = int_to_ptr.hbm [resolvable:$true] %s1844_s9 }
  0xdf   : > { %v1618_v27 = vsel %vm1616_vm12, %v1601_v4, %v1428_v58 }
  0xe1   : > { %v1468_v6 = vpop.permute.xlu1 %1467  ;;  %v1222_v7 = vpop.permute.xlu2 %1221 }
  0xe2   : > { %v1635_v22 = vsel %vm1633_vm13, %v1618_v27, %v1468_v6  ;;  %v1541_v13 = vsel %vm1523_vm6, %v2191_v16, %v1222_v7  ;;  %v2189_v6 = vld [vmem:[%s2553_s10 + $0x24] sm:$0xff]  ;;  %s2365_s10 = sshra.s32 %s1845_s9, 4  ;;  %s2366_s10 = int_to_ptr.hbm [resolvable:$true] %s2365_s10 }
  0xe3   : > { %s2367_s11 = scalar_lea.hbm %s2366_s10, 64  ;;  %p2372_p2 = scmp.lt.s32.totalorder %s2366_s10, %s3313_s3 }
  0xe4   : > { %p2368_p13 = scmp.ne.s32.totalorder %s2366_s10, %s2367_s11  ;;  %p2373_p4 = scmp.lt.s32.totalorder %s2371_s4, %s2367_s11 }
  0xe5   : > { %v1432_v8 = vpop.permute.xlu0 %1431 }
  0xe6   : > { %v1622_v23 = vsel %vm1616_vm12, %v1605_v10, %v1432_v8  ;;  %p2369_p0 = pnand %p2368_p13, %p2527_p3  ;;  %p2374_p5 = por %p2373_p4, %p2372_p2 }
  0xe7   : > { %v1639_v37 = vsel %vm1633_vm13, %v1622_v23, %v1472_v62 }
  0xe8   : > { %p2370_p1 = pneg %p2369_p0 }
  0xe9   : > { %v1512_v57 = vpop.permute.xlu1 %1511  ;;  %v1266_v24 = vpop.permute.xlu2 %1265 }
  0xea   : > { %v1656_v59 = vsel %vm1650_vm14, %v1639_v37, %v1512_v57  ;;  %p2375_p6 = pnand %p2374_p5, %p2370_p1 }
  0xeb   : > { %2172 = vmatmul.msk.bf16.vlgmr.msra.gmra.mxu1 %vm1691_vm15, %v1656_v59 }
  0xed   : > { %v1508_v32 = vpop.permute.xlu0 %1507 }
  0xee   : > { %v1652_v60 = vsel %vm1650_vm14, %v1635_v22, %v1508_v32 }
  0xef   : > { %2170 = vmatmul.msk.bf16.vlgmr.msra.gmra.mxu0 %vm1691_vm15, %v1652_v60 }
  0xf1   : > { %v1262_v45 = vpop.permute.xlu1 %1261  ;;  %v1350_v20 = vpop.permute.xlu2 %1349 }
  0xf2   : > { %v1560_v1 = vsel %vm1548_vm7, %v1541_v13, %v1262_v45 }
  0xf5   : > { %v1226_v14 = vpop.permute.xlu0 %1225 }
  0xf6   : > { %v1547_v58 = vsel %vm1523_vm6, %v2193_v28, %v1226_v14 }
  0xf7   : > { %v1564_v31 = vsel %vm1548_vm7, %v1547_v58, %v1266_v24 }
  0xf9   : > { %v1314_v47 = vpop.permute.xlu1 %1313  ;;  %v1394_v30 = vpop.permute.xlu2 %1393 }
  0xfa   : > { %v1581_v63 = vsel %vm1565_vm8, %v1564_v31, %v1314_v47  ;;  %v3232_v47 = vld [vmem:[%s3312_s2] ss:$0 sm:$0xff] }
  0xfd   : > { %v1310_v38 = vpop.permute.xlu0 %1309 }
  0xfe   : > { %v1577_v41 = vsel %vm1565_vm8, %v1560_v1, %v1310_v38 }
  0xff   : > { %v1594_v44 = vsel %vm1582_vm10, %v1577_v41, %v1350_v20 }
 0x101   : > { %v1390_v33 = vpop.permute.xlu1 %1389  ;;  %v1214_v15 = vpop.permute.xlu2 %1213 }
 0x102   : > { %v1611_v26 = vsel %vm1599_vm11, %v1594_v44, %v1390_v33  ;;  %v1529_v0 = vsel %vm1523_vm6, %v2187_v54, %v1214_v15 }
 0x105   : > { %v1354_v12 = vpop.permute.xlu0 %1353 }
 0x106   : > { %v1598_v35 = vsel %vm1582_vm10, %v1581_v63, %v1354_v12 }
 0x107   : > { %v1615_v3 = vsel %vm1599_vm11, %v1598_v35, %v1394_v30 }
 0x109   : > { %v1442_v39 = vpop.permute.xlu1 %1441  ;;  %v1482_v49 = vpop.permute.xlu2 %1481 }
 0x10a   : > { %v1632_v34 = vsel %vm1616_vm12, %v1615_v3, %v1442_v39 }
 0x10b   : > { %v1649_v9 = vsel %vm1633_vm13, %v1632_v34, %v1482_v49 }
 0x10d   : > { %v1438_v42 = vpop.permute.xlu0 %1437 }
 0x10e   : > { %v1628_v46 = vsel %vm1616_vm12, %v1611_v26, %v1438_v42 }
 0x111   : > { %v1478_v50 = vpop.permute.xlu1 %1477  ;;  %v1518_v52 = vpop.permute.xlu2 %1517 }
 0x112   : > { %v1645_v29 = vsel %vm1633_vm13, %v1628_v46, %v1478_v50 }
 0x113   : > { %v1662_v55 = vsel %vm1650_vm14, %v1645_v29, %v1518_v52 }
 0x114   : > { %2175 = vmatmul.msk.bf16.gmra.mxu2 %vm1691_vm15, %v1662_v55 }
 0x115   : > { %v1218_v36 = vpop.permute.xlu0 %1217 }
 0x116   : > { %v1535_v10 = vsel %vm1523_vm6, %v2189_v6, %v1218_v36 }
 0x119   : > { %v1258_v48 = vpop.permute.xlu1 %1257  ;;  %v1306_v2 = vpop.permute.xlu2 %1305 }
 0x11a   : > { %v1556_v8 = vsel %vm1548_vm7, %v1535_v10, %v1258_v48 }
 0x11b   : > { %v1573_v24 = vsel %vm1565_vm8, %v1556_v8, %v1306_v2 }
 0x11d   : > { %v1254_v25 = vpop.permute.xlu0 %1253 }
 0x11e   : > { %v1552_v7 = vsel %vm1548_vm7, %v1529_v0, %v1254_v25 }
 0x121   : > { %v1302_v17 = vpop.permute.xlu1 %1301 }
 0x122   : > { %v1569_v18 = vsel %vm1565_vm8, %v1552_v7, %v1302_v17 }
 0x124   : > { %v1382_v62 = vpop.permute.xlu2 %1381 }
 0x125   : > { %v1522_v40 = vpop.permute.xlu0 %1521 }
 0x126   : > { %v1666_v11 = vsel %vm1650_vm14, %v1649_v9, %v1522_v40 }
 0x127   : > { %2177 = vmatmul.msk.bf16.gmra.mxu3 %vm1691_vm15, %v1666_v11 }
 0x129   : > { %v1346_v51 = vpop.permute.xlu1 %1345 }
 0x12a   : > { %v1590_v59 = vsel %vm1582_vm10, %v1573_v24, %v1346_v51 }
 0x12c   : > { %v1434_v61 = vpop.permute.xlu2 %1433 }
 0x12d   : > { %v1342_v56 = vpop.permute.xlu0 %1341 }
 0x12e   : > { %v1586_v21 = vsel %vm1582_vm10, %v1569_v18, %v1342_v56 }
 0x12f   : > { %v1603_v23 = vsel %vm1599_vm11, %v1586_v21, %v1382_v62 }
 0x131   : > { %v1430_v19 = vpop.permute.xlu1 %1429 }
 0x132   : > { %v1620_v5 = vsel %vm1616_vm12, %v1603_v23, %v1430_v19 }
 0x134   : > { %v1510_v43 = vpop.permute.xlu2 %1509 }
 0x135   : > { %v1386_v53 = vpop.permute.xlu0 %1385 }
 0x136   : > { %v1607_v27 = vsel %vm1599_vm11, %v1590_v59, %v1386_v53 }
 0x137   : > { %v1624_v32 = vsel %vm1616_vm12, %v1607_v27, %v1434_v61 }
 0x139   : > { %v1474_v22 = vpop.permute.xlu1 %1473 }
 0x13a   : > { %v1641_v60 = vsel %vm1633_vm13, %v1624_v32, %v1474_v22 }
 0x13d   : > { %v1470_v4 = vpop.permute.xlu0 %1469 }
 0x13e   : > { %v1637_v57 = vsel %vm1633_vm13, %v1620_v5, %v1470_v4 }
 0x13f   : > { %v1654_v37 = vsel %vm1650_vm14, %v1637_v57, %v1510_v43 }
 0x140   : > { %2171 = vmatmul.msk.bf16.gmra.mxu0 %vm1691_vm15, %v1654_v37 }
 0x145   : > { %v1514_v45 = vpop.permute.xlu0 %1513 }
 0x146   : > { %v1658_v20 = vsel %vm1650_vm14, %v1641_v60, %v1514_v45 }
 0x147   : > { %2173 = vmatmul.msk.bf16.gmra.mxu1 %vm1691_vm15, %v1658_v20 }
 0x14e   : > { %v1751_v14 = vpop.f32.mrf.mxu3 }
 0x14f   : > { %v1752_v38 = vadd.f32 %v3232_v47, %v1751_v14 }
 0x151   : > { %v1773_v15 = vmul.f32 0.1, %v1752_v38 }
 0x152   : > { %v1741_v30 = vpop.f32.mrf.mxu2 }
 0x153   : > { %v1742_v16 = vadd.f32 %v3232_v47, %v1741_v30  ;;  %v1789_v49 = vmax.f32 %v1752_v38, %v1773_v15 }
 0x155   : > { %v1769_v1 = vmul.f32 0.1, %v1742_v16 }
 0x156   : > { %v1753_v33 = vpop.f32.mrf.mxu3 }
 0x157   : > { %v1754_v12 = vadd.f32 %v3232_v47, %v1753_v33  ;;  %v1785_v46 = vmax.f32 %v1742_v16, %v1769_v1 }
 0x159   : > { %v1774_v13 = vmul.f32 0.1, %v1754_v12 }
 0x15a   : > { %v1743_v39 = vpop.f32.mrf.mxu2 }
 0x15b   : > { %v1790_v41 = vmax.f32 %v1754_v12, %v1774_v13  ;;  %v1744_v42 = vadd.f32 %v3232_v47, %v1743_v39 }
 0x15d   : > { %v2246_v44 = vpack.c.bf16 %v1790_v41, %v1789_v49  ;;  %v1770_v26 = vmul.f32 0.1, %v1744_v42 }
 0x15f   : > { %2258 = vst [vmem:[%s3241_s28 + $0x30] sm:$0xff] %v2246_v44   ;;  %v1786_v50 = vmax.f32 %v1744_v42, %v1770_v26 }
 0x161   : > { %v2236_v52 = vpack.c.bf16 %v1786_v50, %v1785_v46 }
 0x163   : > { %2256 = vst [vmem:[%s3241_s28 + $0x20] sm:$0xff] %v2236_v52  }
 0x168   : > { %v1731_v29 = vpop.f32.mrf.mxu1 }
 0x169   : > { %v1732_v28 = vadd.f32 %v3232_v47, %v1731_v29 }
 0x16b   : > { %v1765_v58 = vmul.f32 0.1, %v1732_v28 }
 0x16c   : > { %v1721_v55 = vpop.f32.mrf.mxu0 }
 0x16d   : > { %v1722_v31 = vadd.f32 %v3232_v47, %v1721_v55  ;;  %v1781_v48 = vmax.f32 %v1732_v28, %v1765_v58 }
 0x16f   : > { %v1761_v3 = vmul.f32 0.1, %v1722_v31 }
 0x170   : > { %v1733_v36 = vpop.f32.mrf.mxu1 }
 0x171   : > { %v1734_v63 = vadd.f32 %v3232_v47, %v1733_v36  ;;  %v1777_v11 = vmax.f32 %v1722_v31, %v1761_v3 }
 0x173   : > { %v1766_v25 = vmul.f32 0.1, %v1734_v63 }
 0x174   : > { %v1723_v35 = vpop.f32.mrf.mxu0 }
 0x175   : > { %v1782_v34 = vmax.f32 %v1734_v63, %v1766_v25  ;;  %v1724_v2 = vadd.f32 %v3232_v47, %v1723_v35 }
 0x177   : > { %v2226_v9 = vpack.c.bf16 %v1782_v34, %v1781_v48  ;;  %v1762_v40 = vmul.f32 0.1, %v1724_v2 }
 0x179   : > { %2254 = vst [vmem:[%s3241_s28 + $0x10] sm:$0xff] %v2226_v9   ;;  %v1778_v17 = vmax.f32 %v1724_v2, %v1762_v40 }
 0x17b   : > { %v2216_v62 = vpack.c.bf16 %v1778_v17, %v1777_v11 }
 0x17d   : > { %2217 = vst [vmem:[%s3241_s28] sm:$0xff] %v2216_v62  }
 0x197   : > { %v1746_v56 = vpop.f32.mrf.mxu2 }
 0x198   : > { %v1747_v51 = vadd.f32 %v3232_v47, %v1746_v56 }
 0x19a   : > { %v1771_v61 = vmul.f32 0.1, %v1747_v51 }
 0x19c   : > { %v1787_v6 = vmax.f32 %v1747_v51, %v1771_v61 }
 0x19f   : > { %v1748_v54 = vpop.f32.mrf.mxu2 }
 0x1a0   : > { %v1749_v53 = vadd.f32 %v3232_v47, %v1748_v54 }
 0x1a2   : > { %v1772_v0 = vmul.f32 0.1, %v1749_v53 }
 0x1a4   : > { %v1788_v7 = vmax.f32 %v1749_v53, %v1772_v0 }
 0x1a6   : > { %v2241_v18 = vpack.c.bf16 %v1788_v7, %v1787_v6 }
 0x1a8   : > { %2257 = vst [vmem:[%s3241_s28 + $0x28] sm:$0xff] %v2241_v18  }
 0x1aa   : > { %v1756_v19 = vpop.f32.mrf.mxu3 }
 0x1ab   : > { %v1757_v21 = vadd.f32 %v3232_v47, %v1756_v19 }
 0x1ad   : > { %v1775_v8 = vmul.f32 0.1, %v1757_v21 }
 0x1af   : > { %v1791_v5 = vmax.f32 %v1757_v21, %v1775_v8 }
 0x1b2   : > { %v1758_v10 = vpop.f32.mrf.mxu3 }
 0x1b3   : > { %v1759_v23 = vadd.f32 %v3232_v47, %v1758_v10 }
 0x1b5   : > { %v1776_v43 = vmul.f32 0.1, %v1759_v23 }
 0x1b7   : > { %v1792_v4 = vmax.f32 %v1759_v23, %v1776_v43 }
 0x1b9   : > { %v2251_v57 = vpack.c.bf16 %v1792_v4, %v1791_v5 }
 0x1bb   : > { %2259 = vst [vmem:[%s3241_s28 + $0x38] sm:$0xff] %v2251_v57  }
 0x1bd   : > { %v1726_v24 = vpop.f32.mrf.mxu0 }
 0x1be   : > { %v1727_v37 = vadd.f32 %v3232_v47, %v1726_v24 }
 0x1c0   : > { %v1763_v22 = vmul.f32 0.1, %v1727_v37 }
 0x1c2   : > { %v1779_v20 = vmax.f32 %v1727_v37, %v1763_v22 }
 0x1c4   : > { %v1736_v59 = vpop.f32.mrf.mxu1 }
 0x1c5   : > { %v1728_v27 = vpop.f32.mrf.mxu0  ;;  %v1737_v45 = vadd.f32 %v3232_v47, %v1736_v59 }
 0x1c6   : > { %v1729_v32 = vadd.f32 %v3232_v47, %v1728_v27 }
 0x1c7   : > { %v1767_v33 = vmul.f32 0.1, %v1737_v45 }
 0x1c8   : > { %v1764_v60 = vmul.f32 0.1, %v1729_v32 }
 0x1c9   : > { %v1783_v12 = vmax.f32 %v1737_v45, %v1767_v33 }
 0x1ca   : > { %v1780_v14 = vmax.f32 %v1729_v32, %v1764_v60 }
 0x1cc   : > { %v2221_v30 = vpack.c.bf16 %v1780_v14, %v1779_v20  ;;  %v1738_v38 = vpop.f32.mrf.mxu1 }
 0x1cd   : > { %v1739_v15 = vadd.f32 %v3232_v47, %v1738_v38 }
 0x1ce   : > { %2253 = vst [vmem:[%s3241_s28 + $0x8] sm:$0xff] %v2221_v30  }
 0x1cf   : > { %v1768_v16 = vmul.f32 0.1, %v1739_v15 }
 0x1d1   : > { %v1784_v13 = vmax.f32 %v1739_v15, %v1768_v16 }
 0x1d3   : > { %v2231_v39 = vpack.c.bf16 %v1784_v13, %v1783_v12 }
 0x1d5   : > { %2255 = vst [vmem:[%s3241_s28 + $0x18] sm:$0xff] %v2231_v39  }
 0x1d6   : > { %2378 = shalt.err (!%p2375_p6)
}
 0x1d7   : > { %s2455_s24 = smov 64  }
 0x1d8   : > { %2270 = dma.vmem_to_hbm [thread:$0]  (%p2527_p3), %s1843_s8, 1024, %s1845_s9, %s1826_s20, %s2455_s24, %s2455_s24, %s2449_s21  }
 0x1d9 PF: > { %p2276_p7 = scmp.ge.s32.totalorder %s2445_s19, 2  ;;  %s1859_s28 = sand.u32 1, %s2417_s12  }
 0x1da   : > { %s1860_s15 = scalar_lea.sflag [#allocation3], %s1859_s28 }
 0x1db   : > { %p2273_p9 = pnand %p2276_p7, %p2536_p8 }
 0x1dd   : > { %p2274_p10 = pneg %p2273_p9 }
 0x1df   : > { %2412 = dma.done.wait (%p2274_p10), %s1860_s15, 1024  }
 0x1e0   : > { %2414 = vsyncadd (%p2274_p10), %s1860_s15, 4294966272  ;;  %s16_s19 = sadd.s32 1, %s2445_s19   ;;  %s3320_s12 = smov %s2421_s13 }
 0x1e1   : > { %p13_p11 = scmp.ge.s32.totalorder %s16_s19, 6   ;;  %s3321_s13 = smov %s2425_s14 }
 0x1e2   : > { %s3322_s14 = smov %s2545_s30  ;;  %s3323_s15 = smov %s2437_s17 }
 0x1e3   : > { %s3324_s16 = smov %s2441_s18  ;;  %s3325_s17 = smov %s3328_s22 }
 0x1e4   : > { %s3326_s18 = smov %s3332_s23  ;;  %15 = sbr.rel (!%p13_p11) target bundleno = 5 (0x5), region = 76 }
 0x1e9   :  { %1866 = vsyncpa [#allocation3], 1 }
 0x1ea   :  { %1868 = vsyncpa [#allocation3 + $0x1], 1 }

</bundles_post_ra>
